<compile_context>
chip_gen: v7x
topology: tpu7x:2x2x1
jax: 0.10.0
libtpu: 0.0.40
codegen_flags: <defaults>
</compile_context>

<pallas_src>
import numpy as np
import jax
import jax.numpy as jnp
from jax.experimental import pallas as pl
from jax.experimental.pallas import tpu as pltpu


def _make_operators(H, W, P):
    """Split dense ortho rfft2 / irfft2 operators (float64 on host, cast to f32).

    Returns mfr, mfi of shape (H*W, P) and mir, mii of shape (P, H*W); padded
    columns/rows (P - H*(W//2+1)) are zero so they contribute nothing.
    """
    Wr = W // 2 + 1
    HW, HWr = H * W, H * Wr
    h = np.arange(H)
    w = np.arange(W)
    kh = np.arange(H)
    kw = np.arange(Wr)
    scale = 1.0 / np.sqrt(H * W)                       # norm='ortho'

    # Forward: X[kh,kw] = scale * sum_{h,w} x[h,w] * exp(-i*theta)
    theta = 2.0 * np.pi * (
        h[:, None, None, None] * kh[None, None, :, None] / H
        + w[None, :, None, None] * kw[None, None, None, :] / W)        # (H, W, H, Wr)
    mfr = (np.cos(theta) * scale).reshape(HW, HWr)
    mfi = (-np.sin(theta) * scale).reshape(HW, HWr)

    # Inverse with the Hermitian fold baked in:
    #   out[h,w] = scale * sum_{kh,kw} c[kw] * (Yr*cos(phi) - Yi*sin(phi))
    c = np.full((Wr,), 2.0)
    c[0] = 1.0
    if W % 2 == 0:
        c[-1] = 1.0
    phi = 2.0 * np.pi * (
        kh[:, None, None, None] * h[None, None, :, None] / H
        + kw[None, :, None, None] * w[None, None, None, :] / W)        # (H, Wr, H, W)
    cf = c[None, :, None, None]
    mir = (cf * np.cos(phi) * scale).reshape(HWr, HW)
    mii = (-cf * np.sin(phi) * scale).reshape(HWr, HW)

    pad_c = lambda m: np.pad(m, ((0, 0), (0, P - HWr)))
    pad_r = lambda m: np.pad(m, ((0, P - HWr), (0, 0)))
    f32 = lambda m: jnp.asarray(m, jnp.float32)
    return f32(pad_c(mfr)), f32(pad_c(mfi)), f32(pad_r(mir)), f32(pad_r(mii))


def _device_params():
    """(max useful MXU rows, number of TensorCores) for the local TPU generation."""
    try:
        kind = jax.devices()[0].device_kind.lower()
    except Exception:
        kind = ""
    if "v5 lite" in kind or "v5e" in kind or "v5lite" in kind:
        return 128, 1                                  # v5e MXU is 4x128x128, 1 TC
    num_tc = 2 if "v7" in kind else 1                  # v7x has 2 TCs per chip
    return 256, num_tc


def _pick_row_tile(cd, b, max_rows, num_tc):
    """Largest multiple-of-8 divisor of C*D up to max_rows MXU rows.

    On multi-TC parts (v7x) prefer a tile that still leaves >= num_tc total
    'parallel' grid steps so both cores get work.
    """
    cands = [rt for rt in range(8, cd + 1, 8) if cd % rt == 0 and rt <= max_rows]
    if not cands:
        return cd                                      # full-axis block is always legal
    ok = [rt for rt in cands if b * (cd // rt) >= num_tc]
    return max(ok) if ok else max(cands)


def ffparser_kernel(x_ref, g_ref, mfr_ref, mfi_ref, mir_ref, mii_ref, o_ref):
    P = mir_ref.shape[0]
    x = x_ref[...].astype(jnp.float32)                 # (RT, H*W) lane-dense; VPU cast is free
    g = g_ref[...]                                     # (RT, 2P) = [real | imag]
    wr = g[:, :P]                                      # 128-aligned lane slices
    wi = g[:, P:]

    # rfft2 as two merged 2-D MXU matmuls (K = H*W), no concat/relayout.
    sr = jnp.dot(x, mfr_ref[...], preferred_element_type=jnp.float32)   # (RT, P)
    si = jnp.dot(x, mfi_ref[...], preferred_element_type=jnp.float32)

    # complex spectral gating: (sr + i si) * (wr + i wi)
    yr = sr * wr - si * wi
    yi = sr * wi + si * wr

    # irfft2 (Hermitian fold baked into mir/mii) as two accumulating MXU matmuls.
    out = jnp.dot(yr, mir_ref[...], preferred_element_type=jnp.float32)
    out = out + jnp.dot(yi, mii_ref[...], preferred_element_type=jnp.float32)
    o_ref[...] = out


def ffparser_forward(x, complex_weight):
    """x: (B, C, D, H, W); complex_weight: (C, D, H, W//2+1, 2). Returns f32 (B,C,D,H,W)."""
    B, C, D, H, W = x.shape
    assert H == W, 'height and width are not equal'
    Wr = W // 2 + 1
    CD, HW, HWr = C * D, H * W, H * Wr
    P = ((HWr + 127) // 128) * 128                     # lane-aligned half-spectrum width
    N = B * CD

    mfr, mfi, mir, mii = _make_operators(H, W, P)

    # Keep half-precision activations in storage dtype (cast in-kernel on the VPU);
    # everything else is pre-cast, matching x.to(torch.float32).
    if x.dtype not in (jnp.bfloat16, jnp.float16, jnp.float32):
        x = x.astype(jnp.float32)
    x3 = x.reshape(B, CD, HW)                          # lane-dense rows, no per-B copies

    # Gate packed ONCE as (CD, 2P) = [real | imag]; not duplicated over batch.
    wr = complex_weight[..., 0].astype(jnp.float32).reshape(CD, HWr)
    wi = complex_weight[..., 1].astype(jnp.float32).reshape(CD, HWr)
    gate = jnp.concatenate(
        [jnp.pad(wr, ((0, 0), (0, P - HWr))),
         jnp.pad(wi, ((0, 0), (0, P - HWr)))], axis=-1)                 # (CD, 2P)

    max_rows, num_tc = _device_params()
    RT = _pick_row_tile(CD, B, max_rows, num_tc)
    nr = CD // RT if CD % RT == 0 else 1
    if CD % RT != 0:
        RT = CD
    grid = (nr, B)                                     # batch innermost -> gate block reused

    flops = N * (8 * HW * P + 6 * P)
    bytes_accessed = (N * HW * x3.dtype.itemsize       # x read
                      + CD * 2 * P * 4                 # gate read (once, not per batch)
                      + 4 * HW * P * 4                 # DFT operators
                      + N * HW * 4)                    # output write

    def _op_spec(shape, buffered):
        if buffered and hasattr(pl, "Buffered"):
            return pl.BlockSpec(shape, lambda r, b: (0, 0),
                                pipeline_mode=pl.Buffered(1))
        return pl.BlockSpec(shape, lambda r, b: (0, 0))

    def _run(buffered_ops):
        op_bufs = 1 if (buffered_ops and hasattr(pl, "Buffered")) else 2
        # Derived VMEM budget: double-buffered x/gate/out tiles + resident operators
        # + Sr/Si/Yr/Yi intermediates, +30% headroom, clamped to [4 MiB, 64 MiB].
        vmem_bytes = (2 * RT * HW * x3.dtype.itemsize
                      + 2 * RT * (2 * P) * 4
                      + 2 * RT * HW * 4
                      + op_bufs * 4 * HW * P * 4
                      + 6 * RT * P * 4)
        vmem_limit = int(vmem_bytes * 1.3) + (2 << 20)
        vmem_limit = min(max(vmem_limit, 4 << 20), 64 << 20)

        return pl.pallas_call(
            ffparser_kernel,
            out_shape=jax.ShapeDtypeStruct((B, CD, HW), jnp.float32),
            grid=grid,
            in_specs=[
                pl.BlockSpec((None, RT, HW), lambda r, b: (b, r, 0)),   # x rows (tiled)
                pl.BlockSpec((RT, 2 * P), lambda r, b: (r, 0)),         # packed gate [re|im]
                _op_spec((HW, P), buffered_ops),                        # rfft2 real op
                _op_spec((HW, P), buffered_ops),                        # rfft2 imag op
                _op_spec((P, HW), buffered_ops),                        # irfft2 real op
                _op_spec((P, HW), buffered_ops),                        # irfft2 imag op
            ],
            out_specs=pl.BlockSpec((None, RT, HW), lambda r, b: (b, r, 0)),
            compiler_params=pltpu.CompilerParams(
                dimension_semantics=("parallel", "parallel"),
                vmem_limit_bytes=vmem_limit),
            cost_estimate=pl.CostEstimate(
                flops=int(flops), transcendentals=0,
                bytes_accessed=int(bytes_accessed)),
        )(x3, gate, mfr, mfi, mir, mii)

    try:
        out3 = _run(buffered_ops=True)
    except Exception:
        # Conservative fallback for jax versions where pipeline_mode=Buffered(1)
        # on constant blocks is not supported.
        out3 = _run(buffered_ops=False)

    return out3.reshape(B, C, D, H, W)


if __name__ == "__main__":
    key = jax.random.PRNGKey(0)
    B, C, D, H, W = 2, 4, 4, 16, 16
    kx, kw = jax.random.split(key)
    x = jax.random.normal(kx, (B, C, D, H, W), dtype=jnp.float32)
    # deterministic synthetic parameter, same shape/scale as nn.Parameter in __init__
    complex_weight = 0.02 * jax.random.normal(kw, (C, D, H, W // 2 + 1, 2), dtype=jnp.float32)

    y = jax.block_until_ready(ffparser_forward(x, complex_weight))

    # Host-side float64 reference with numpy's FFT (matches torch.fft semantics).
    x_np = np.asarray(x, dtype=np.float64)
    w_np = np.asarray(complex_weight, dtype=np.float64)
    w_c = w_np[..., 0] + 1j * w_np[..., 1]
    Xf = np.fft.rfft2(x_np, axes=(3, 4), norm='ortho')
    ref = np.fft.irfft2(Xf * w_c, s=(H, W), axes=(3, 4), norm='ortho')

    assert y.shape == (B, C, D, H, W)
    max_err = float(np.max(np.abs(np.asarray(y, dtype=np.float64) - ref)))
    assert max_err < 1e-4, f"max abs error {max_err}"
    print("KERNEL_OK")
</pallas_src>

<mosaic_0001>
module attributes {stable_mosaic.version = 11 : i64} {
  func.func @ffparser_kernel(%arg0: i32, %arg1: i32, %arg2: memref<1x16x256xf32, #tpu.memory_space<vmem>>, %arg3: memref<16x512xf32, #tpu.memory_space<vmem>>, %arg4: memref<256x256xf32, #tpu.memory_space<vmem>>, %arg5: memref<256x256xf32, #tpu.memory_space<vmem>>, %arg6: memref<256x256xf32, #tpu.memory_space<vmem>>, %arg7: memref<256x256xf32, #tpu.memory_space<vmem>>, %arg8: memref<1x16x256xf32, #tpu.memory_space<vmem>>) attributes {dimension_semantics = [#tpu.dimension_semantics<parallel>, #tpu.dimension_semantics<parallel>], iteration_bounds = array<i64: 1, 2>, scalar_prefetch = 0 : i64, scratch_operands = 0 : i64, tpu.core_type = #tpu.core_type<tc>, window_params = [{transform_indices = @transform_0, window_bounds = array<i64: 1, 16, 256>}, {transform_indices = @transform_1, window_bounds = array<i64: 16, 512>}, {pipeline_mode = #tpu.pipeline_mode<synchronous>, transform_indices = @transform_2, window_bounds = array<i64: 256, 256>}, {pipeline_mode = #tpu.pipeline_mode<synchronous>, transform_indices = @transform_3, window_bounds = array<i64: 256, 256>}, {pipeline_mode = #tpu.pipeline_mode<synchronous>, transform_indices = @transform_4, window_bounds = array<i64: 256, 256>}, {pipeline_mode = #tpu.pipeline_mode<synchronous>, transform_indices = @transform_5, window_bounds = array<i64: 256, 256>}, {transform_indices = @transform_6, window_bounds = array<i64: 1, 16, 256>}]} {
    %c0 = arith.constant 0 : index
    %c0_0 = arith.constant 0 : index
    %c0_1 = arith.constant 0 : index
    %0 = vector.load %arg2[%c0, %c0_0, %c0_1] : memref<1x16x256xf32, #tpu.memory_space<vmem>>, vector<1x16x256xf32>
    %1 = vector.shape_cast %0 : vector<1x16x256xf32> to vector<16x256xf32>
    %c0_2 = arith.constant 0 : index
    %c0_3 = arith.constant 0 : index
    %2 = vector.load %arg3[%c0_2, %c0_3] : memref<16x512xf32, #tpu.memory_space<vmem>>, vector<16x512xf32>
    %3 = vector.extract_strided_slice %2 {offsets = [0, 0], sizes = [16, 256], strides = [1, 1]} : vector<16x512xf32> to vector<16x256xf32>
    %4 = vector.extract_strided_slice %2 {offsets = [0, 256], sizes = [16, 256], strides = [1, 1]} : vector<16x512xf32> to vector<16x256xf32>
    %c0_4 = arith.constant 0 : index
    %c0_5 = arith.constant 0 : index
    %5 = vector.load %arg4[%c0_4, %c0_5] : memref<256x256xf32, #tpu.memory_space<vmem>>, vector<256x256xf32>
    %cst = arith.constant dense<0.000000e+00> : vector<16x256xf32>
    %6 = tpu.matmul %1, %5, %cst {dimension_numbers = #tpu.dot_dimension_numbers<[1], [0], [0], [1], [0, 0, 1, 1], [], []>} : vector<16x256xf32>, vector<256x256xf32>, vector<16x256xf32> -> vector<16x256xf32>
    %c0_6 = arith.constant 0 : index
    %c0_7 = arith.constant 0 : index
    %7 = vector.load %arg5[%c0_6, %c0_7] : memref<256x256xf32, #tpu.memory_space<vmem>>, vector<256x256xf32>
    %cst_8 = arith.constant dense<0.000000e+00> : vector<16x256xf32>
    %8 = tpu.matmul %1, %7, %cst_8 {dimension_numbers = #tpu.dot_dimension_numbers<[1], [0], [0], [1], [0, 0, 1, 1], [], []>} : vector<16x256xf32>, vector<256x256xf32>, vector<16x256xf32> -> vector<16x256xf32>
    %9 = arith.mulf %6, %3 : vector<16x256xf32>
    %10 = arith.mulf %8, %4 : vector<16x256xf32>
    %11 = arith.subf %9, %10 : vector<16x256xf32>
    %12 = arith.mulf %6, %4 : vector<16x256xf32>
    %13 = arith.mulf %8, %3 : vector<16x256xf32>
    %14 = arith.addf %12, %13 : vector<16x256xf32>
    %c0_9 = arith.constant 0 : index
    %c0_10 = arith.constant 0 : index
    %15 = vector.load %arg6[%c0_9, %c0_10] : memref<256x256xf32, #tpu.memory_space<vmem>>, vector<256x256xf32>
    %cst_11 = arith.constant dense<0.000000e+00> : vector<16x256xf32>
    %16 = tpu.matmul %11, %15, %cst_11 {dimension_numbers = #tpu.dot_dimension_numbers<[1], [0], [0], [1], [0, 0, 1, 1], [], []>} : vector<16x256xf32>, vector<256x256xf32>, vector<16x256xf32> -> vector<16x256xf32>
    %c0_12 = arith.constant 0 : index
    %c0_13 = arith.constant 0 : index
    %17 = vector.load %arg7[%c0_12, %c0_13] : memref<256x256xf32, #tpu.memory_space<vmem>>, vector<256x256xf32>
    %cst_14 = arith.constant dense<0.000000e+00> : vector<16x256xf32>
    %18 = tpu.matmul %14, %17, %cst_14 {dimension_numbers = #tpu.dot_dimension_numbers<[1], [0], [0], [1], [0, 0, 1, 1], [], []>} : vector<16x256xf32>, vector<256x256xf32>, vector<16x256xf32> -> vector<16x256xf32>
    %19 = arith.addf %16, %18 : vector<16x256xf32>
    %c0_15 = arith.constant 0 : index
    %c0_16 = arith.constant 0 : index
    %c0_17 = arith.constant 0 : index
    %20 = vector.load %arg8[%c0_15, %c0_16, %c0_17] : memref<1x16x256xf32, #tpu.memory_space<vmem>>, vector<1x16x256xf32>
    %21 = vector.shape_cast %20 : vector<1x16x256xf32> to vector<16x256xf32>
    %22 = vector.shape_cast %19 : vector<16x256xf32> to vector<1x16x256xf32>
    tpu.vector_store %arg8[%c0_15, %c0_16, %c0_17], %22 {strides = array<i32>} : memref<1x16x256xf32, #tpu.memory_space<vmem>>, vector<1x16x256xf32>,
    return
  }
  func.func @transform_0(%arg0: i32, %arg1: i32) -> (i32, i32, i32) {
    %c0_i32 = arith.constant 0 : i32
    %c0_i32_0 = arith.constant 0 : i32
    return %arg1, %arg0, %c0_i32 : i32, i32, i32
  }
  func.func @transform_1(%arg0: i32, %arg1: i32) -> (i32, i32) {
    %c0_i32 = arith.constant 0 : i32
    %c0_i32_0 = arith.constant 0 : i32
    return %arg0, %c0_i32 : i32, i32
  }
  func.func @transform_2(%arg0: i32, %arg1: i32) -> (i32, i32) {
    %c0_i32 = arith.constant 0 : i32
    %c0_i32_0 = arith.constant 0 : i32
    %c0_i32_1 = arith.constant 0 : i32
    return %c0_i32, %c0_i32_0 : i32, i32
  }
  func.func @transform_3(%arg0: i32, %arg1: i32) -> (i32, i32) {
    %c0_i32 = arith.constant 0 : i32
    %c0_i32_0 = arith.constant 0 : i32
    %c0_i32_1 = arith.constant 0 : i32
    return %c0_i32, %c0_i32_0 : i32, i32
  }
  func.func @transform_4(%arg0: i32, %arg1: i32) -> (i32, i32) {
    %c0_i32 = arith.constant 0 : i32
    %c0_i32_0 = arith.constant 0 : i32
    %c0_i32_1 = arith.constant 0 : i32
    return %c0_i32, %c0_i32_0 : i32, i32
  }
  func.func @transform_5(%arg0: i32, %arg1: i32) -> (i32, i32) {
    %c0_i32 = arith.constant 0 : i32
    %c0_i32_0 = arith.constant 0 : i32
    %c0_i32_1 = arith.constant 0 : i32
    return %c0_i32, %c0_i32_0 : i32, i32
  }
  func.func @transform_6(%arg0: i32, %arg1: i32) -> (i32, i32, i32) {
    %c0_i32 = arith.constant 0 : i32
    %c0_i32_0 = arith.constant 0 : i32
    return %arg1, %arg0, %c0_i32 : i32, i32, i32
  }
}

module attributes {stable_mosaic.version = 11 : i64} {
  func.func @ffparser_kernel(%arg0: i32, %arg1: i32, %arg2: memref<1x16x256xf32, #tpu.memory_space<vmem>>, %arg3: memref<16x512xf32, #tpu.memory_space<vmem>>, %arg4: memref<256x256xf32, #tpu.memory_space<vmem>>, %arg5: memref<256x256xf32, #tpu.memory_space<vmem>>, %arg6: memref<256x256xf32, #tpu.memory_space<vmem>>, %arg7: memref<256x256xf32, #tpu.memory_space<vmem>>, %arg8: memref<1x16x256xf32, #tpu.memory_space<vmem>>) attributes {dimension_semantics = [#tpu.dimension_semantics<parallel>, #tpu.dimension_semantics<parallel>], iteration_bounds = array<i64: 1, 2>, scalar_prefetch = 0 : i64, scratch_operands = 0 : i64, tpu.core_type = #tpu.core_type<tc>, window_params = [{transform_indices = @transform_0, window_bounds = array<i64: 1, 16, 256>}, {transform_indices = @transform_1, window_bounds = array<i64: 16, 512>}, {pipeline_mode = #tpu.pipeline_mode<synchronous>, transform_indices = @transform_2, window_bounds = array<i64: 256, 256>}, {pipeline_mode = #tpu.pipeline_mode<synchronous>, transform_indices = @transform_3, window_bounds = array<i64: 256, 256>}, {pipeline_mode = #tpu.pipeline_mode<synchronous>, transform_indices = @transform_4, window_bounds = array<i64: 256, 256>}, {pipeline_mode = #tpu.pipeline_mode<synchronous>, transform_indices = @transform_5, window_bounds = array<i64: 256, 256>}, {transform_indices = @transform_6, window_bounds = array<i64: 1, 16, 256>}]} {
    %c0 = arith.constant 0 : index
    %c0_0 = arith.constant 0 : index
    %c0_1 = arith.constant 0 : index
    %0 = vector.load %arg2[%c0, %c0_0, %c0_1] : memref<1x16x256xf32, #tpu.memory_space<vmem>>, vector<1x16x256xf32>
    %1 = vector.shape_cast %0 : vector<1x16x256xf32> to vector<16x256xf32>
    %c0_2 = arith.constant 0 : index
    %c0_3 = arith.constant 0 : index
    %2 = vector.load %arg3[%c0_2, %c0_3] : memref<16x512xf32, #tpu.memory_space<vmem>>, vector<16x512xf32>
    %3 = vector.extract_strided_slice %2 {offsets = [0, 0], sizes = [16, 256], strides = [1, 1]} : vector<16x512xf32> to vector<16x256xf32>
    %4 = vector.extract_strided_slice %2 {offsets = [0, 256], sizes = [16, 256], strides = [1, 1]} : vector<16x512xf32> to vector<16x256xf32>
    %c0_4 = arith.constant 0 : index
    %c0_5 = arith.constant 0 : index
    %5 = vector.load %arg4[%c0_4, %c0_5] : memref<256x256xf32, #tpu.memory_space<vmem>>, vector<256x256xf32>
    %cst = arith.constant dense<0.000000e+00> : vector<16x256xf32>
    %6 = tpu.matmul %1, %5, %cst {dimension_numbers = #tpu.dot_dimension_numbers<[1], [0], [0], [1], [0, 0, 1, 1], [], []>} : vector<16x256xf32>, vector<256x256xf32>, vector<16x256xf32> -> vector<16x256xf32>
    %c0_6 = arith.constant 0 : index
    %c0_7 = arith.constant 0 : index
    %7 = vector.load %arg5[%c0_6, %c0_7] : memref<256x256xf32, #tpu.memory_space<vmem>>, vector<256x256xf32>
    %cst_8 = arith.constant dense<0.000000e+00> : vector<16x256xf32>
    %8 = tpu.matmul %1, %7, %cst_8 {dimension_numbers = #tpu.dot_dimension_numbers<[1], [0], [0], [1], [0, 0, 1, 1], [], []>} : vector<16x256xf32>, vector<256x256xf32>, vector<16x256xf32> -> vector<16x256xf32>
    %9 = arith.mulf %6, %3 : vector<16x256xf32>
    %10 = arith.mulf %8, %4 : vector<16x256xf32>
    %11 = arith.subf %9, %10 : vector<16x256xf32>
    %12 = arith.mulf %6, %4 : vector<16x256xf32>
    %13 = arith.mulf %8, %3 : vector<16x256xf32>
    %14 = arith.addf %12, %13 : vector<16x256xf32>
    %c0_9 = arith.constant 0 : index
    %c0_10 = arith.constant 0 : index
    %15 = vector.load %arg6[%c0_9, %c0_10] : memref<256x256xf32, #tpu.memory_space<vmem>>, vector<256x256xf32>
    %cst_11 = arith.constant dense<0.000000e+00> : vector<16x256xf32>
    %16 = tpu.matmul %11, %15, %cst_11 {dimension_numbers = #tpu.dot_dimension_numbers<[1], [0], [0], [1], [0, 0, 1, 1], [], []>} : vector<16x256xf32>, vector<256x256xf32>, vector<16x256xf32> -> vector<16x256xf32>
    %c0_12 = arith.constant 0 : index
    %c0_13 = arith.constant 0 : index
    %17 = vector.load %arg7[%c0_12, %c0_13] : memref<256x256xf32, #tpu.memory_space<vmem>>, vector<256x256xf32>
    %cst_14 = arith.constant dense<0.000000e+00> : vector<16x256xf32>
    %18 = tpu.matmul %14, %17, %cst_14 {dimension_numbers = #tpu.dot_dimension_numbers<[1], [0], [0], [1], [0, 0, 1, 1], [], []>} : vector<16x256xf32>, vector<256x256xf32>, vector<16x256xf32> -> vector<16x256xf32>
    %19 = arith.addf %16, %18 : vector<16x256xf32>
    %c0_15 = arith.constant 0 : index
    %c0_16 = arith.constant 0 : index
    %c0_17 = arith.constant 0 : index
    %20 = vector.load %arg8[%c0_15, %c0_16, %c0_17] : memref<1x16x256xf32, #tpu.memory_space<vmem>>, vector<1x16x256xf32>
    %21 = vector.shape_cast %20 : vector<1x16x256xf32> to vector<16x256xf32>
    %22 = vector.shape_cast %19 : vector<16x256xf32> to vector<1x16x256xf32>
    tpu.vector_store %arg8[%c0_15, %c0_16, %c0_17], %22 {strides = array<i32>} : memref<1x16x256xf32, #tpu.memory_space<vmem>>, vector<1x16x256xf32>,
    return
  }
  func.func @transform_0(%arg0: i32, %arg1: i32) -> (i32, i32, i32) {
    %c0_i32 = arith.constant 0 : i32
    %c0_i32_0 = arith.constant 0 : i32
    return %arg1, %arg0, %c0_i32 : i32, i32, i32
  }
  func.func @transform_1(%arg0: i32, %arg1: i32) -> (i32, i32) {
    %c0_i32 = arith.constant 0 : i32
    %c0_i32_0 = arith.constant 0 : i32
    return %arg0, %c0_i32 : i32, i32
  }
  func.func @transform_2(%arg0: i32, %arg1: i32) -> (i32, i32) {
    %c0_i32 = arith.constant 0 : i32
    %c0_i32_0 = arith.constant 0 : i32
    %c0_i32_1 = arith.constant 0 : i32
    return %c0_i32, %c0_i32_0 : i32, i32
  }
  func.func @transform_3(%arg0: i32, %arg1: i32) -> (i32, i32) {
    %c0_i32 = arith.constant 0 : i32
    %c0_i32_0 = arith.constant 0 : i32
    %c0_i32_1 = arith.constant 0 : i32
    return %c0_i32, %c0_i32_0 : i32, i32
  }
  func.func @transform_4(%arg0: i32, %arg1: i32) -> (i32, i32) {
    %c0_i32 = arith.constant 0 : i32
    %c0_i32_0 = arith.constant 0 : i32
    %c0_i32_1 = arith.constant 0 : i32
    return %c0_i32, %c0_i32_0 : i32, i32
  }
  func.func @transform_5(%arg0: i32, %arg1: i32) -> (i32, i32) {
    %c0_i32 = arith.constant 0 : i32
    %c0_i32_0 = arith.constant 0 : i32
    %c0_i32_1 = arith.constant 0 : i32
    return %c0_i32, %c0_i32_0 : i32, i32
  }
  func.func @transform_6(%arg0: i32, %arg1: i32) -> (i32, i32, i32) {
    %c0_i32 = arith.constant 0 : i32
    %c0_i32_0 = arith.constant 0 : i32
    return %arg1, %arg0, %c0_i32 : i32, i32, i32
  }
}

</mosaic_0001>

<bundles_post_ra>
// kernel: tpu_custom_call.1
= control target key start
LH: loop header
LB: loop body
LE: loop exit
PB: predicated region body
PF: predicated region fallthrough
CT: control target
= control target key end

     0   :  { %s2225_s0 = inlined_call_operand.hbm [shape: f32[2,16,256], index: 0, kind: input, shape index: {}]   ;;  %s2226_s1 = inlined_call_operand.hbm [shape: f32[16,512], index: 1, kind: input, shape index: {}]   ;;  %s2227_s2 = inlined_call_operand.hbm [shape: f32[256,256], index: 2, kind: input, shape index: {}]   ;;  %s2228_s3 = inlined_call_operand.hbm [shape: f32[256,256], index: 3, kind: input, shape index: {}]   ;;  %s2229_s4 = inlined_call_operand.hbm [shape: f32[256,256], index: 4, kind: input, shape index: {}]   ;;  %s2230_s5 = inlined_call_operand.hbm [shape: f32[256,256], index: 5, kind: input, shape index: {}]   ;;  %s2231_s6 = inlined_call_operand.hbm [shape: f32[2,16,256], index: 6, kind: output, shape index: {}]  }
   0x1   :  { %2239 = sst [smem:[#allocation19_spill]] %s2231_s6 }
   0x2   :  { %11 = vsyncpa [#allocation3], 0 }
   0x3   :  { %13 = vsyncpa [#allocation3 + $0x1], 0 }
   0x4   :  { %14 = vsyncpa [#allocation6], 0 }
   0x5   :  { %15 = vsyncpa [#allocation9], 0 }
   0x6   :  { %16 = vsyncpa [#allocation12], 0 }
   0x7   :  { %17 = vsyncpa [#allocation4], 0 }
   0x8   :  { %19 = vsyncpa [#allocation4 + $0x1], 0  ;;  %s1852_s21 = smov 0   ;;  %s1854_s22 = smov 0  }
   0x9   :  { %s1856_s23 = smov 0   ;;  %s1858_s24 = smov 0  }
   0xa   :  { %s1860_s25 = smov 0   ;;  %s1862_s26 = smov 0  }
   0xb LB: > { %s2235_s27 = sadd.s32 4294967295, %s1802_s26   ;;  %p1134_p0 = scmp.ge.s32.totalorder %s1802_s26, 1  ;;  %s1802_s26 = sphi %s1862_s26, %s25_s26   ;;  %s1798_s25 = sphi %s1860_s25, %s2262_s25   ;;  %s1794_s24 = sphi %s1858_s24, %s2261_s24   ;;  %s1790_s23 = sphi %s1856_s23, %s2260_s23   ;;  %s1786_s22 = sphi %s1854_s22, %s2259_s22   ;;  %s1782_s21 = sphi %s1852_s21, %s2258_s21  }
   0xc   : > { %p1886_p1 = scmp.eq.s32.totalorder %s2235_s27, 0  ;;  %p208_p2 = scmp.lt.s32.totalorder %s1802_s26, 3 }
   0xd   : > { %s1804_s30 = smov [#allocation5]   ;;  %s1805_s9 = smov [#allocation8]  }
   0xe   : > { %s2240_s28 = scalar_select %p1886_p1, 1, 0 }
   0xf   : > { %p1891_p3 = pnand %p1134_p0, %p208_p2  ;;  %s224_s7 = sshll.u32 %s1804_s30, 4  ;;  %s225_s7 = int_to_ptr.vmem [resolvable:$true] %s224_s7 }
  0x10   : > { %s250_s10 = sshll.u32 %s1805_s9, 4  ;;  %s1538_s13 = scalar_lea.hbm %s2226_s1, 1024  ;;  %s251_s10 = int_to_ptr.vmem [resolvable:$true] %s250_s10 }
  0x11   : > { %s2241_s29 = scalar_select %p1891_p3, 1, 0 }
  0x12   : > { %p1443_p4 = pneg %p1891_p3  ;;  %p1539_p7 = scmp.ne.s32.totalorder %s2226_s1, %s1538_s13 }
  0x13   : > { %p1545_p11 = scmp.lt.u32.totalorder %s1538_s13, %s2226_s1 }
  0x14   : > { %p1900_p6 = pnand %p1443_p4, %p1886_p1 }
  0x16   : > { %p1912_p8 = pneg %p1900_p6 }
  0x18   : > { %p1541_p9 = pnand %p1912_p8, %p1539_p7 }
  0x1a   : > { %p1542_p10 = pneg %p1541_p9 }
  0x1c   : > { %p1547_p12 = pnand %p1545_p11, %p1542_p10 }
  0x1e   : > { %1550 = shalt.err (!%p1547_p12)
}
  0x1f   : > { %s1551_s19 = scalar_lea.vmem %s225_s7, 1024  ;;  %p1559_p4 = scmp.lt.s32.totalorder %s225_s7, %s225_s7 }
  0x20   : > { %p1552_p13 = scmp.ne.s32.totalorder %s225_s7, %s1551_s19  ;;  %p1560_p5 = scmp.lt.s32.totalorder %s1551_s19, %s1551_s19 }
  0x22   : > { %p1554_p0 = pnand %p1552_p13, %p1912_p8  ;;  %p1561_p3 = por %p1560_p5, %p1559_p4 }
  0x24   : > { %p1555_p2 = pneg %p1554_p0 }
  0x26   : > { %p1562_p1 = pnand %p1561_p3, %p1555_p2 }
  0x28   : > { %1565 = shalt.err (!%p1562_p1)
}
  0x29   : > { %s1806_s20 = smov 512   ;;  %s1807_s30 = smov 32  }
  0x2a   : > { %1446 = dma.hbm_to_vmem [thread:$0]  (!%p1900_p6), %s2226_s1, 1024, %s225_s7, [#allocation6], %s1806_s20, %s1806_s20, %s1807_s30  }
  0x2b   : > { %s1808_s12 = smov [#allocation7]   ;;  %s1566_s17 = scalar_lea.hbm %s2228_s3, 8192 }
  0x2c   : > { %s237_s13 = sshll.u32 %s1808_s12, 4  ;;  %p1567_p1 = scmp.ne.s32.totalorder %s2228_s3, %s1566_s17  ;;  %s238_s13 = int_to_ptr.vmem [resolvable:$true] %s237_s13 }
  0x2d   : > { %p1573_p7 = scmp.lt.u32.totalorder %s1566_s17, %s2228_s3 }
  0x2e   : > { %p1569_p3 = pnand %p1567_p1, %p1912_p8 }
  0x30   : > { %p1570_p5 = pneg %p1569_p3 }
  0x32   : > { %p1575_p9 = pnand %p1573_p7, %p1570_p5 }
  0x34   : > { %1578 = shalt.err (!%p1575_p9)
}
  0x35   : > { %s1579_s7 = scalar_lea.vmem %s251_s10, 8192  ;;  %p1587_p13 = scmp.lt.s32.totalorder %s251_s10, %s251_s10 }
  0x36   : > { %p1580_p10 = scmp.ne.s32.totalorder %s251_s10, %s1579_s7  ;;  %p1588_p0 = scmp.lt.s32.totalorder %s1579_s7, %s1579_s7 }
  0x38   : > { %p1582_p11 = pnand %p1580_p10, %p1912_p8  ;;  %p1589_p2 = por %p1588_p0, %p1587_p13 }
  0x3a   : > { %p1583_p12 = pneg %p1582_p11 }
  0x3c   : > { %p1590_p4 = pnand %p1589_p2, %p1583_p12 }
  0x3e   : > { %1593 = shalt.err (!%p1590_p4)
}
  0x3f   : > { %s2237_s20 = smov 256   ;;  %s1810_s30 = smov 16  }
  0x40   : > { %1452 = dma.hbm_to_vmem [thread:$0]  (!%p1900_p6), %s2228_s3, 8192, %s251_s10, [#allocation9], %s2237_s20, %s2237_s20, %s1810_s30  }
  0x41   : > { %s1594_s12 = scalar_lea.hbm %s2227_s2, 8192 }
  0x42   : > { %p1595_p1 = scmp.ne.s32.totalorder %s2227_s2, %s1594_s12  ;;  %p1601_p7 = scmp.lt.u32.totalorder %s1594_s12, %s2227_s2 }
  0x44   : > { %p1597_p3 = pnand %p1595_p1, %p1912_p8 }
  0x46   : > { %p1598_p5 = pneg %p1597_p3 }
  0x48   : > { %p1603_p9 = pnand %p1601_p7, %p1598_p5 }
  0x4a   : > { %1606 = shalt.err (!%p1603_p9)
}
  0x4b   : > { %s1607_s19 = scalar_lea.vmem %s238_s13, 8192  ;;  %p1615_p13 = scmp.lt.s32.totalorder %s238_s13, %s238_s13 }
  0x4c   : > { %p1608_p10 = scmp.ne.s32.totalorder %s238_s13, %s1607_s19  ;;  %p1616_p0 = scmp.lt.s32.totalorder %s1607_s19, %s1607_s19 }
  0x4e   : > { %p1610_p11 = pnand %p1608_p10, %p1912_p8  ;;  %p1617_p2 = por %p1616_p0, %p1615_p13 }
  0x50   : > { %p1611_p12 = pneg %p1610_p11 }
  0x52   : > { %p1618_p4 = pnand %p1617_p2, %p1611_p12 }
  0x54   : > { %1621 = shalt.err (!%p1618_p4)
}
  0x55   : > { %1449 = dma.hbm_to_vmem [thread:$0]  (!%p1900_p6), %s2227_s2, 8192, %s238_s13, [#allocation6], %s2237_s20, %s2237_s20, %s1810_s30  }
  0x56   : > { %s1811_s6 = smov [#allocation10]   ;;  %s1812_s9 = smov [#allocation11]  }
  0x57   : > { %s263_s27 = sshll.u32 %s1811_s6, 4  ;;  %s276_s11 = sshll.u32 %s1812_s9, 4  ;;  %s264_s27 = int_to_ptr.vmem [resolvable:$true] %s263_s27  ;;  %s277_s11 = int_to_ptr.vmem [resolvable:$true] %s276_s11 }
  0x58   : > { %s1622_s15 = scalar_lea.hbm %s2229_s4, 8192 }
  0x59   : > { %p1623_p1 = scmp.ne.s32.totalorder %s2229_s4, %s1622_s15  ;;  %p1629_p7 = scmp.lt.u32.totalorder %s1622_s15, %s2229_s4 }
  0x5b   : > { %p1625_p3 = pnand %p1623_p1, %p1912_p8 }
  0x5d   : > { %p1626_p5 = pneg %p1625_p3 }
  0x5f   : > { %p1631_p9 = pnand %p1629_p7, %p1626_p5 }
  0x61   : > { %1634 = shalt.err (!%p1631_p9)
}
  0x62   : > { %s1635_s13 = scalar_lea.vmem %s264_s27, 8192  ;;  %p1643_p13 = scmp.lt.s32.totalorder %s264_s27, %s264_s27 }
  0x63   : > { %p1636_p10 = scmp.ne.s32.totalorder %s264_s27, %s1635_s13  ;;  %p1644_p0 = scmp.lt.s32.totalorder %s1635_s13, %s1635_s13 }
  0x65   : > { %p1638_p11 = pnand %p1636_p10, %p1912_p8  ;;  %p1645_p2 = por %p1644_p0, %p1643_p13 }
  0x67   : > { %p1639_p12 = pneg %p1638_p11 }
  0x69   : > { %p1646_p4 = pnand %p1645_p2, %p1639_p12 }
  0x6b   : > { %1649 = shalt.err (!%p1646_p4)
}
  0x6c   : > { %1455 = dma.hbm_to_vmem [thread:$0]  (!%p1900_p6), %s2229_s4, 8192, %s264_s27, [#allocation9], %s2237_s20, %s2237_s20, %s1810_s30  }
  0x6d   : > { %s1650_s14 = scalar_lea.hbm %s2230_s5, 8192 }
  0x6e   : > { %p1651_p1 = scmp.ne.s32.totalorder %s2230_s5, %s1650_s14  ;;  %p1657_p7 = scmp.lt.u32.totalorder %s1650_s14, %s2230_s5 }
  0x70   : > { %p1653_p3 = pnand %p1651_p1, %p1912_p8 }
  0x72   : > { %p1654_p5 = pneg %p1653_p3 }
  0x74   : > { %p1659_p9 = pnand %p1657_p7, %p1654_p5 }
  0x76   : > { %1662 = shalt.err (!%p1659_p9)
}
  0x77   : > { %s1663_s10 = scalar_lea.vmem %s277_s11, 8192  ;;  %p1671_p13 = scmp.lt.s32.totalorder %s277_s11, %s277_s11 }
  0x78   : > { %p1664_p10 = scmp.ne.s32.totalorder %s277_s11, %s1663_s10  ;;  %p1672_p0 = scmp.lt.s32.totalorder %s1663_s10, %s1663_s10 }
  0x7a   : > { %p1666_p11 = pnand %p1664_p10, %p1912_p8  ;;  %p1673_p2 = por %p1672_p0, %p1671_p13 }
  0x7c   : > { %p1667_p12 = pneg %p1666_p11 }
  0x7e   : > { %p1674_p4 = pnand %p1673_p2, %p1667_p12 }
  0x80   : > { %1677 = shalt.err (!%p1674_p4)
}
  0x81   : > { %1458 = dma.hbm_to_vmem [thread:$0]  (!%p1900_p6), %s2230_s5, 8192, %s277_s11, [#allocation12], %s2237_s20, %s2237_s20, %s1810_s30  }
  0x82   : > { %s1133_s8 = sadd.s32 4294967294, %s1802_s26   ;;  %s34_s16 = sadd.s32 1, %s1798_s25 }
  0x83   : > { %s46_s7 = sadd.s32 1, %s1790_s23  ;;  %p35_p8 = scmp.ge.s32.totalorder %s34_s16, 2 }
  0x84   : > { %p53_p1 = scmp.ne.s32.totalorder %s1790_s23, %s1786_s22  ;;  %p54_p3 = scmp.eq.s32.totalorder %s1802_s26, 0 }
  0x85   : > { %p59_p5 = scmp.ne.s32.totalorder %s1786_s22, %s1782_s21  ;;  %s2264_s16 = smov (%p35_p8, %s34_s16), 0 }
  0x86   : > { %p2022_p7 = por %p54_p3, %p53_p1  ;;  %p2245_p9 = scmp.ne.s32.totalorder %s2240_s28, 0 }
  0x87   : > { %s41_s9 = ssub.s32 %s1798_s25, %s2264_s16  ;;  %s2247_s12 = sadd.s32 4294967295, %s1802_s26  }
  0x88   : > { %p2028_p6 = por %p2245_p9, %p59_p5  ;;  %p195_p10 = scmp.eq.s32.totalorder %s2247_s12, 1 }
  0x89   : > { %p44_p11 = scmp.eq.s32.totalorder %s41_s9, 0  ;;  %p201_p12 = scmp.eq.s32.totalorder %s1133_s8, 1 }
  0x8a   : > { %p2036_p13 = por %p195_p10, %p53_p1  ;;  %p1472_p0 = scmp.lt.s32.totalorder %s1802_s26, 2 }
  0x8b   : > { %s2042_s15 = scalar_select %p44_p11, %s1790_s23, %s46_s7  }
  0x8c   : > { %s2248_s14 = scalar_select %p2036_p13, 1, 0 }
  0x8d   : > { %p2044_p2 = por %p201_p12, %p59_p5  ;;  %s290_s18 = sand.u32 1, %s1790_s23  }
  0x8e   : > { %s1141_s19 = sshll.u32 %s290_s18, 5  ;;  %s1157_s10 = sshll.u32 %s1798_s25, 9 }
  0x8f   : > { %s2249_s17 = scalar_select %p2044_p2, 1, 0 }
  0x90   : > { %s2053_s12 = scalar_lea.hbm %s2225_s0, %s1157_s10  ;;  %s294_s8 = scalar_lea.vmem [#allocation2], %s1141_s19 }
  0x91   : > { %s304_s9 = sshll.u32 %s294_s8, 4  ;;  %p2059_p4 = pnand %p1472_p0, %p2022_p7  ;;  %s2055_s9 = int_to_ptr.vmem [resolvable:$true] %s304_s9 }
  0x92   : > { %s2063_s20 = scalar_lea.sflag [#allocation3], %s290_s18  ;;  %s1678_s27 = scalar_lea.hbm %s2053_s12, 512 }
  0x93   : > { %p1679_p8 = scmp.ne.s32.totalorder %s2053_s12, %s1678_s27  ;;  %p1680_p1 = pneg %p2059_p4 }
  0x94   : > { %s1683_s6 = scalar_lea.hbm %s2225_s0, 1024  ;;  %p1684_p7 = scmp.lt.u32.totalorder %s2053_s12, %s2225_s0 }
  0x95   : > { %p1681_p3 = pnand %p1680_p1, %p1679_p8  ;;  %p1685_p9 = scmp.lt.u32.totalorder %s1683_s6, %s1678_s27 }
  0x96   : > { %p1687_p11 = scmp.lt.u32.totalorder %s1678_s27, %s2053_s12 }
  0x97   : > { %p1682_p5 = pneg %p1681_p3  ;;  %p1686_p10 = por %p1685_p9, %p1684_p7 }
  0x99   : > { %p1688_p12 = por %p1687_p11, %p1686_p10 }
  0x9b   : > { %p1689_p0 = pnand %p1688_p12, %p1682_p5 }
  0x9d   : > { %1692 = shalt.err (!%p1689_p0)
}
  0x9e   : > { %s1693_s18 = scalar_lea.vmem %s2055_s9, 512  ;;  %s1813_s19 = smov [#allocation2]  }
  0x9f   : > { %p1694_p8 = scmp.ne.s32.totalorder %s2055_s9, %s1693_s18  ;;  %s1698_s10 = sshll.u32 %s1813_s19, 4  ;;  %s1699_s10 = int_to_ptr.vmem [resolvable:$false] %s1698_s10 }
  0xa0   : > { %s1700_s13 = scalar_lea.vmem %s1699_s10, 1024  ;;  %p1701_p13 = scmp.lt.s32.totalorder %s2055_s9, %s1699_s10 }
  0xa1   : > { %p1696_p3 = pnand %p1694_p8, %p1680_p1  ;;  %p1702_p7 = scmp.lt.s32.totalorder %s1700_s13, %s1693_s18 }
  0xa3   : > { %p1697_p2 = pneg %p1696_p3  ;;  %p1703_p9 = por %p1702_p7, %p1701_p13 }
  0xa5   : > { %p1704_p10 = pnand %p1703_p9, %p1697_p2 }
  0xa7   : > { %1707 = shalt.err (!%p1704_p10)
}
  0xa8   : > { %s2251_s27 = smov 256   ;;  %p2252_p1 = scmp.ne.s32.totalorder %s2241_s29, 0 }
  0xa9   : > { %1462 = dma.hbm_to_vmem [thread:$0]  (!%p2059_p4), %s2053_s12, 512, %s2055_s9, %s2063_s20, %s2251_s27, %s2251_s27, %s1810_s30  }
  0xaa   : > { %316 = sbr.rel (%p2252_p1) target bundleno = 830 (0x33e), region = 44  ;;  %s2097_s6 = sand.u32 (!%p2252_p1), 1, %s1786_s22  }
  0xab   : > { %s1145_s8 = sshll.u32 (!%p2252_p1), %s2097_s6, 5  ;;  %s319_s18 = scalar_lea.sflag (!%p2252_p1), [#allocation3], %s2097_s6 }
  0xac   : > { %s2103_s7 = scalar_lea.vmem (!%p2252_p1), [#allocation2], %s1145_s8 }
  0xb1   : > { %1761 = dma.done.wait (%p2028_p6), %s319_s18, 512  }
  0xb2   : > { %1763 = vsyncadd (%p2028_p6), %s319_s18, 4294966784  ;;  %p2253_p13 = scmp.ne.s32.totalorder %s2240_s28, 0 }
  0xb4   : > { %1765 = dma.done.wait (%p2253_p13), [#allocation6], 9216  }
  0xb5   : > { %1767 = vsyncadd (%p2253_p13), [#allocation6], 4294958080 }
  0xb6   : > { %1769 = dma.done.wait (%p2253_p13), [#allocation9], 16384  }
  0xb7   : > { %1771 = vsyncadd (%p2253_p13), [#allocation9], 4294950912 }
  0xb8   : > { %1773 = dma.done.wait (%p2253_p13), [#allocation12], 8192  }
  0xb9   : > { %1775 = vsyncadd (%p2253_p13), [#allocation12], 4294959104  ;;  %v387_v0 = vld [vmem:[#allocation7 + $0x8] sm:$0xff]  ;;  %v389_v1 = vld [vmem:[#allocation7 + $0x18] sm:$0xff]  ;;  %s370_s28 = scalar_lea.vmem [#allocation13], %s1145_s8  ;;  %s1158_s20 = sshll.u32 %s1794_s24, 9 }
  0xba   : > { %v386_v2 = vld [vmem:[#allocation7] sm:$0xff]  ;;  %v1159_v3 = vpack.c.bf16 %v389_v1, %v387_v0  ;;  %v388_v4 = vld [vmem:[#allocation7 + $0x10] sm:$0xff]  ;;  %v391_v5 = vld [vmem:[#allocation7 + $0x28] sm:$0xff]  ;;  %s995_s29 = sshll.u32 %s370_s28, 4  ;;  %s2254_s12 = sld [smem:[#allocation19_spill]]  ;;  %s2171_s29 = int_to_ptr.vmem [resolvable:$true] %s995_s29 }
  0xbb   : > { %v393_v6 = vld [vmem:[#allocation7 + $0x38] sm:$0xff]  ;;  %v1161_v7 = vpack.c.bf16 %v388_v4, %v386_v2  ;;  %v390_v9 = vld [vmem:[#allocation7 + $0x20] sm:$0xff]  ;;  %v392_v10 = vld [vmem:[#allocation7 + $0x30] sm:$0xff]  ;;  %s979_s19 = scalar_lea.sflag [#allocation4], %s2097_s6  ;;  %s1708_s10 = scalar_lea.vmem %s2171_s29, 512 }
  0xbc   : > { %v1163_v8 = vpack.c.bf16 %v393_v6, %v391_v5  ;;  %v395_v11 = vld [vmem:[#allocation7 + $0x48] sm:$0xff]  ;;  %1160 = vmatprep.subr.bf16.mxu1 %v1159_v3  ;;  %v397_v12 = vld [vmem:[#allocation7 + $0x58] sm:$0xff]  ;;  %v1165_v13 = vpack.c.bf16 %v392_v10, %v390_v9  ;;  %v394_v15 = vld [vmem:[#allocation7 + $0x40] sm:$0xff]  ;;  %p1709_p6 = scmp.ne.s32.totalorder %s2171_s29, %s1708_s10  ;;  %p2255_p2 = scmp.ne.s32.totalorder %s2248_s14, 0 }
  0xbd   : > { %1162 = vmatpush1.bf16.msra.mxu1 %v1161_v7  ;;  %v1167_v14 = vpack.c.bf16 %v397_v12, %v395_v11  ;;  %v396_v16 = vld [vmem:[#allocation7 + $0x50] sm:$0xff]  ;;  %v399_v17 = vld [vmem:[#allocation7 + $0x68] sm:$0xff]  ;;  %v401_v18 = vld [vmem:[#allocation7 + $0x78] sm:$0xff]  ;;  %s1814_s24 = smov [#allocation13]  }
  0xbe   : > { %1164 = vmatprep.subr.bf16.mxu1 %v1163_v8  ;;  %v1169_v19 = vpack.c.bf16 %v396_v16, %v394_v15  ;;  %v1171_v20 = vpack.c.bf16 %v401_v18, %v399_v17  ;;  %v398_v21 = vld [vmem:[#allocation7 + $0x60] sm:$0xff]  ;;  %v400_v22 = vld [vmem:[#allocation7 + $0x70] sm:$0xff]  ;;  %v403_v23 = vld [vmem:[#allocation7 + $0x88] sm:$0xff]  ;;  %p1710_p4 = pnand %p1709_p6, %p2255_p2  ;;  %s1712_s13 = sshll.u32 %s1814_s24, 4  ;;  %s1713_s13 = int_to_ptr.vmem [resolvable:$false] %s1712_s13 }
  0xbf   : > { %v405_v24 = vld [vmem:[#allocation7 + $0x98] sm:$0xff]  ;;  %v1173_v25 = vpack.c.bf16 %v400_v22, %v398_v21  ;;  %v402_v27 = vld [vmem:[#allocation7 + $0x80] sm:$0xff]  ;;  %v404_v28 = vld [vmem:[#allocation7 + $0x90] sm:$0xff]  ;;  %s1714_s27 = scalar_lea.vmem %s1713_s13, 1024  ;;  %p1715_p11 = scmp.lt.s32.totalorder %s2171_s29, %s1713_s13 }
  0xc0   : > { %v1175_v26 = vpack.c.bf16 %v405_v24, %v403_v23  ;;  %v407_v29 = vld [vmem:[#allocation7 + $0xa8] sm:$0xff]  ;;  %v409_v30 = vld [vmem:[#allocation7 + $0xb8] sm:$0xff]  ;;  %v1177_v31 = vpack.c.bf16 %v404_v28, %v402_v27  ;;  %v406_v33 = vld [vmem:[#allocation7 + $0xa0] sm:$0xff]  ;;  %s2176_s9 = scalar_lea.hbm %s2254_s12, %s1158_s20  ;;  %p1711_p5 = pneg %p1710_p4 }
  0xc1   : > { %1166 = vmatpush1.bf16.msra.mxu1 %v1165_v13  ;;  %v1179_v32 = vpack.c.bf16 %v409_v30, %v407_v29  ;;  %v408_v34 = vld [vmem:[#allocation7 + $0xb0] sm:$0xff]  ;;  %v411_v35 = vld [vmem:[#allocation7 + $0xc8] sm:$0xff]  ;;  %v413_v36 = vld [vmem:[#allocation7 + $0xd8] sm:$0xff]  ;;  %p1716_p12 = scmp.lt.s32.totalorder %s1714_s27, %s1708_s10 }
  0xc2   : > { %1168 = vmatprep.subr.bf16.mxu1 %v1167_v14  ;;  %v1181_v37 = vpack.c.bf16 %v408_v34, %v406_v33  ;;  %v1183_v38 = vpack.c.bf16 %v413_v36, %v411_v35  ;;  %v410_v39 = vld [vmem:[#allocation7 + $0xc0] sm:$0xff]  ;;  %v412_v40 = vld [vmem:[#allocation7 + $0xd0] sm:$0xff]  ;;  %v2122_v41 = vld [vmem:[%s2103_s7 + $0x8] sm:$0xff] }
  0xc3   : > { %v415_v42 = vld [vmem:[#allocation7 + $0xe8] sm:$0xff]  ;;  %v417_v43 = vld [vmem:[#allocation7 + $0xf8] sm:$0xff]  ;;  %514 = vmatprep.mubr.f32.mxu1 %v2122_v41  ;;  %v1185_v44 = vpack.c.bf16 %v412_v40, %v410_v39  ;;  %v414_v46 = vld [vmem:[#allocation7 + $0xe0] sm:$0xff]  ;;  %p1717_p0 = por %p1716_p12, %p1715_p11 }
  0xc4   : > { %v1187_v45 = vpack.c.bf16 %v417_v43, %v415_v42  ;;  %v416_v47 = vld [vmem:[#allocation7 + $0xf0] sm:$0xff]  ;;  %v419_v48 = vld [vmem:[#allocation7 + $0x108] sm:$0xff]  ;;  %v421_v49 = vld [vmem:[#allocation7 + $0x118] sm:$0xff] }
  0xc5   : > { %1170 = vmatpush1.bf16.msra.mxu1 %v1169_v19  ;;  %v1189_v50 = vpack.c.bf16 %v416_v47, %v414_v46  ;;  %v1191_v51 = vpack.c.bf16 %v421_v49, %v419_v48  ;;  %v418_v52 = vld [vmem:[#allocation7 + $0x100] sm:$0xff]  ;;  %v420_v53 = vld [vmem:[#allocation7 + $0x110] sm:$0xff]  ;;  %v423_v54 = vld [vmem:[#allocation7 + $0x128] sm:$0xff]  ;;  %p1718_p8 = pnand %p1717_p0, %p1711_p5 }
  0xc6   : > { %1172 = vmatprep.subr.bf16.mxu1 %v1171_v20  ;;  %v425_v55 = vld [vmem:[#allocation7 + $0x138] sm:$0xff]  ;;  %v1193_v56 = vpack.c.bf16 %v420_v53, %v418_v52  ;;  %v422_v58 = vld [vmem:[#allocation7 + $0x120] sm:$0xff]  ;;  %v424_v59 = vld [vmem:[#allocation7 + $0x130] sm:$0xff] }
  0xc7   : > { %v1195_v57 = vpack.c.bf16 %v425_v55, %v423_v54  ;;  %v427_v60 = vld [vmem:[#allocation7 + $0x148] sm:$0xff]  ;;  %v429_v61 = vld [vmem:[#allocation7 + $0x158] sm:$0xff]  ;;  %v1197_v62 = vpack.c.bf16 %v424_v59, %v422_v58  ;;  %v426_v0 = vld [vmem:[#allocation7 + $0x140] sm:$0xff] }
  0xc8   : > { %v1199_v63 = vpack.c.bf16 %v429_v61, %v427_v60  ;;  %v428_v1 = vld [vmem:[#allocation7 + $0x150] sm:$0xff]  ;;  %v431_v2 = vld [vmem:[#allocation7 + $0x168] sm:$0xff]  ;;  %v433_v3 = vld [vmem:[#allocation7 + $0x178] sm:$0xff] }
  0xc9   : > { %1174 = vmatpush1.bf16.msra.mxu1 %v1173_v25  ;;  %v1201_v4 = vpack.c.bf16 %v428_v1, %v426_v0  ;;  %v1203_v5 = vpack.c.bf16 %v433_v3, %v431_v2  ;;  %v430_v6 = vld [vmem:[#allocation7 + $0x160] sm:$0xff]  ;;  %v432_v7 = vld [vmem:[#allocation7 + $0x170] sm:$0xff]  ;;  %v435_v8 = vld [vmem:[#allocation7 + $0x188] sm:$0xff] }
  0xca   : > { %1176 = vmatprep.subr.bf16.mxu1 %v1175_v26  ;;  %v437_v9 = vld [vmem:[#allocation7 + $0x198] sm:$0xff]  ;;  %v1205_v10 = vpack.c.bf16 %v432_v7, %v430_v6  ;;  %v434_v12 = vld [vmem:[#allocation7 + $0x180] sm:$0xff]  ;;  %v436_v13 = vld [vmem:[#allocation7 + $0x190] sm:$0xff] }
  0xcb   : > { %v1207_v11 = vpack.c.bf16 %v437_v9, %v435_v8  ;;  %v439_v14 = vld [vmem:[#allocation7 + $0x1a8] sm:$0xff]  ;;  %v441_v15 = vld [vmem:[#allocation7 + $0x1b8] sm:$0xff]  ;;  %v1209_v16 = vpack.c.bf16 %v436_v13, %v434_v12  ;;  %v438_v18 = vld [vmem:[#allocation7 + $0x1a0] sm:$0xff] }
  0xcc   : > { %v1211_v17 = vpack.c.bf16 %v441_v15, %v439_v14  ;;  %v440_v19 = vld [vmem:[#allocation7 + $0x1b0] sm:$0xff]  ;;  %v443_v20 = vld [vmem:[#allocation7 + $0x1c8] sm:$0xff]  ;;  %v445_v21 = vld [vmem:[#allocation7 + $0x1d8] sm:$0xff] }
  0xcd   : > { %1178 = vmatpush1.bf16.msra.mxu1 %v1177_v31  ;;  %v1213_v22 = vpack.c.bf16 %v440_v19, %v438_v18  ;;  %v1215_v23 = vpack.c.bf16 %v445_v21, %v443_v20  ;;  %v442_v24 = vld [vmem:[#allocation7 + $0x1c0] sm:$0xff]  ;;  %v444_v25 = vld [vmem:[#allocation7 + $0x1d0] sm:$0xff]  ;;  %v447_v26 = vld [vmem:[#allocation7 + $0x1e8] sm:$0xff] }
  0xce   : > { %1180 = vmatprep.subr.bf16.mxu1 %v1179_v32  ;;  %v449_v27 = vld [vmem:[#allocation7 + $0x1f8] sm:$0xff]  ;;  %v1217_v28 = vpack.c.bf16 %v444_v25, %v442_v24  ;;  %v446_v30 = vld [vmem:[#allocation7 + $0x1e0] sm:$0xff]  ;;  %v448_v31 = vld [vmem:[#allocation7 + $0x1f0] sm:$0xff] }
  0xcf   : > { %v1219_v29 = vpack.c.bf16 %v449_v27, %v447_v26  ;;  %v528_v32 = vld [vmem:[#allocation8 + $0x8] sm:$0xff]  ;;  %v530_v33 = vld [vmem:[#allocation8 + $0x18] sm:$0xff]  ;;  %v1221_v34 = vpack.c.bf16 %v448_v31, %v446_v30  ;;  %v527_v36 = vld [vmem:[#allocation8] sm:$0xff] }
  0xd0   : > { %v1223_v35 = vpack.c.bf16 %v530_v33, %v528_v32  ;;  %v534_v39 = vld [vmem:[#allocation8 + $0x38] sm:$0xff]  ;;  %v2126_v40 = vld [vmem:[%s2103_s7] sm:$0xff]  ;;  %v536_v47 = vld [vmem:[#allocation8 + $0x48] sm:$0xff] }
  0xd1   : > { %1182 = vmatpush1.bf16.msra.mxu1 %v1181_v37  ;;  %v529_v37 = vld [vmem:[#allocation8 + $0x10] sm:$0xff]  ;;  %v2129_v46 = vld [vmem:[%s2103_s7 + $0x18] sm:$0xff]  ;;  %v535_v52 = vld [vmem:[#allocation8 + $0x40] sm:$0xff] }
  0xd2   : > { %1184 = vmatprep.subr.bf16.mxu1 %v1183_v38  ;;  %v532_v38 = vld [vmem:[#allocation8 + $0x28] sm:$0xff]  ;;  %v1225_v42 = vpack.c.bf16 %v529_v37, %v527_v36  ;;  %v538_v48 = vld [vmem:[#allocation8 + $0x58] sm:$0xff]  ;;  %v537_v53 = vld [vmem:[#allocation8 + $0x50] sm:$0xff] }
  0xd3   : > { %v1227_v43 = vpack.c.bf16 %v534_v39, %v532_v38  ;;  %v540_v54 = vld [vmem:[#allocation8 + $0x68] sm:$0xff]  ;;  %v542_v55 = vld [vmem:[#allocation8 + $0x78] sm:$0xff]  ;;  %v539_v58 = vld [vmem:[#allocation8 + $0x60] sm:$0xff] }
  0xd4   : > { %v541_v59 = vld [vmem:[#allocation8 + $0x70] sm:$0xff]  ;;  %v544_v60 = vld [vmem:[#allocation8 + $0x88] sm:$0xff]  ;;  %v546_v61 = vld [vmem:[#allocation8 + $0x98] sm:$0xff] }
  0xd5   : > { %1186 = vmatpush1.bf16.msra.mxu1 %v1185_v44  ;;  %v531_v44 = vld [vmem:[#allocation8 + $0x20] sm:$0xff]  ;;  %v545_v1 = vld [vmem:[#allocation8 + $0x90] sm:$0xff]  ;;  %v548_v2 = vld [vmem:[#allocation8 + $0xa8] sm:$0xff] }
  0xd6   : > { %1188 = vmatprep.subr.bf16.mxu1 %v1187_v45  ;;  %v533_v45 = vld [vmem:[#allocation8 + $0x30] sm:$0xff]  ;;  %v543_v0 = vld [vmem:[#allocation8 + $0x80] sm:$0xff]  ;;  %v550_v3 = vld [vmem:[#allocation8 + $0xb8] sm:$0xff] }
  0xd7   : > { %v1229_v49 = vpack.c.bf16 %v533_v45, %v531_v44  ;;  %v547_v6 = vld [vmem:[#allocation8 + $0xa0] sm:$0xff]  ;;  %v552_v7 = vld [vmem:[#allocation8 + $0xc8] sm:$0xff]  ;;  %v554_v8 = vld [vmem:[#allocation8 + $0xd8] sm:$0xff] }
  0xd8   : > { %v553_v12 = vld [vmem:[#allocation8 + $0xd0] sm:$0xff]  ;;  %v556_v13 = vld [vmem:[#allocation8 + $0xe8] sm:$0xff]  ;;  %v558_v14 = vld [vmem:[#allocation8 + $0xf8] sm:$0xff] }
  0xd9   : > { %1190 = vmatpush1.bf16.msra.mxu1 %v1189_v50  ;;  %v2134_v50 = vld [vmem:[%s2103_s7 + $0x10] sm:$0xff]  ;;  %v560_v19 = vld [vmem:[#allocation8 + $0x108] sm:$0xff]  ;;  %v562_v20 = vld [vmem:[#allocation8 + $0x118] sm:$0xff] }
  0xda   : > { %1192 = vmatprep.subr.bf16.mxu1 %v1191_v51  ;;  %v1231_v51 = vpack.c.bf16 %v538_v48, %v536_v47  ;;  %v557_v18 = vld [vmem:[#allocation8 + $0xf0] sm:$0xff]  ;;  %v564_v25 = vld [vmem:[#allocation8 + $0x128] sm:$0xff]  ;;  %v566_v26 = vld [vmem:[#allocation8 + $0x138] sm:$0xff] }
  0xdb   : > { %v561_v24 = vld [vmem:[#allocation8 + $0x110] sm:$0xff]  ;;  %v568_v31 = vld [vmem:[#allocation8 + $0x148] sm:$0xff]  ;;  %v570_v32 = vld [vmem:[#allocation8 + $0x158] sm:$0xff] }
  0xdc   : > { %v565_v30 = vld [vmem:[#allocation8 + $0x130] sm:$0xff]  ;;  %v572_v37 = vld [vmem:[#allocation8 + $0x168] sm:$0xff]  ;;  %v574_v38 = vld [vmem:[#allocation8 + $0x178] sm:$0xff] }
  0xdd   : > { %1194 = vmatpush1.bf16.msra.mxu1 %v1193_v56  ;;  %v1233_v56 = vpack.c.bf16 %v537_v53, %v535_v52  ;;  %v569_v36 = vld [vmem:[#allocation8 + $0x150] sm:$0xff]  ;;  %v576_v45 = vld [vmem:[#allocation8 + $0x188] sm:$0xff]  ;;  %v578_v47 = vld [vmem:[#allocation8 + $0x198] sm:$0xff] }
  0xde   : > { %1196 = vmatprep.subr.bf16.mxu1 %v1195_v57  ;;  %v1235_v57 = vpack.c.bf16 %v542_v55, %v540_v54  ;;  %v573_v44 = vld [vmem:[#allocation8 + $0x170] sm:$0xff]  ;;  %v580_v53 = vld [vmem:[#allocation8 + $0x1a8] sm:$0xff]  ;;  %v582_v54 = vld [vmem:[#allocation8 + $0x1b8] sm:$0xff] }
  0xdf   : > { %v577_v52 = vld [vmem:[#allocation8 + $0x190] sm:$0xff] }
  0xe1   : > { %1198 = vmatpush1.bf16.msra.mxu1 %v1197_v62  ;;  %v1237_v62 = vpack.c.bf16 %v541_v59, %v539_v58  ;;  %v581_v58 = vld [vmem:[#allocation8 + $0x1b0] sm:$0xff]  ;;  %v584_v59 = vld [vmem:[#allocation8 + $0x1c8] sm:$0xff] }
  0xe2   : > { %1200 = vmatprep.subr.bf16.mxu1 %v1199_v63  ;;  %v1239_v63 = vpack.c.bf16 %v546_v61, %v544_v60  ;;  %v586_v60 = vld [vmem:[#allocation8 + $0x1d8] sm:$0xff] }
  0xe5   : > { %1202 = vmatpush1.bf16.msra.mxu1 %v1201_v4  ;;  %v1241_v4 = vpack.c.bf16 %v545_v1, %v543_v0  ;;  %v585_v0 = vld [vmem:[#allocation8 + $0x1d0] sm:$0xff]  ;;  %v588_v1 = vld [vmem:[#allocation8 + $0x1e8] sm:$0xff] }
  0xe6   : > { %1204 = vmatprep.subr.bf16.mxu1 %v1203_v5  ;;  %v1243_v5 = vpack.c.bf16 %v550_v3, %v548_v2  ;;  %v590_v2 = vld [vmem:[#allocation8 + $0x1f8] sm:$0xff] }
  0xe9   : > { %1206 = vmatpush1.bf16.msra.mxu1 %v1205_v10  ;;  %v1247_v10 = vpack.c.bf16 %v554_v8, %v552_v7  ;;  %v757_v7 = vld [vmem:[#allocation11 + $0x8] sm:$0xff]  ;;  %v759_v8 = vld [vmem:[#allocation11 + $0x18] sm:$0xff] }
  0xea   : > { %1208 = vmatprep.subr.bf16.mxu1 %v1207_v11  ;;  %v551_v11 = vld [vmem:[#allocation8 + $0xc0] sm:$0xff] }
  0xeb   : > { %v1249_v15 = vpack.c.bf16 %v553_v12, %v551_v11  ;;  %v758_v11 = vld [vmem:[#allocation11 + $0x10] sm:$0xff]  ;;  %v761_v12 = vld [vmem:[#allocation11 + $0x28] sm:$0xff] }
  0xed   : > { %1210 = vmatpush1.bf16.msra.mxu1 %v1209_v16  ;;  %v1251_v16 = vpack.c.bf16 %v558_v14, %v556_v13  ;;  %v763_v13 = vld [vmem:[#allocation11 + $0x38] sm:$0xff] }
  0xee   : > { %1212 = vmatprep.subr.bf16.mxu1 %v1211_v17  ;;  %v555_v17 = vld [vmem:[#allocation8 + $0xe0] sm:$0xff] }
  0xef   : > { %v1253_v21 = vpack.c.bf16 %v557_v18, %v555_v17  ;;  %v762_v17 = vld [vmem:[#allocation11 + $0x30] sm:$0xff]  ;;  %v765_v18 = vld [vmem:[#allocation11 + $0x48] sm:$0xff] }
  0xf1   : > { %1214 = vmatpush1.bf16.msra.mxu1 %v1213_v22  ;;  %v1255_v22 = vpack.c.bf16 %v562_v20, %v560_v19  ;;  %v767_v19 = vld [vmem:[#allocation11 + $0x58] sm:$0xff]  ;;  %v764_v20 = vld [vmem:[#allocation11 + $0x40] sm:$0xff] }
  0xf2   : > { %1216 = vmatprep.subr.bf16.mxu1 %v1215_v23  ;;  %v559_v23 = vld [vmem:[#allocation8 + $0x100] sm:$0xff] }
  0xf3   : > { %v1257_v27 = vpack.c.bf16 %v561_v24, %v559_v23 }
  0xf5   : > { %1218 = vmatpush1.bf16.msra.mxu1 %v1217_v28  ;;  %v1259_v28 = vpack.c.bf16 %v566_v26, %v564_v25  ;;  %v768_v25 = vld [vmem:[#allocation11 + $0x60] sm:$0xff]  ;;  %v770_v26 = vld [vmem:[#allocation11 + $0x70] sm:$0xff] }
  0xf6   : > { %1220 = vmatprep.subr.bf16.mxu1 %v1219_v29  ;;  %v563_v29 = vld [vmem:[#allocation8 + $0x120] sm:$0xff] }
  0xf7   : > { %v1261_v33 = vpack.c.bf16 %v565_v30, %v563_v29  ;;  %v1301_v29 = vpack.c.bf16 %v770_v26, %v768_v25 }
  0xf9   : > { %1222 = vmatpush1.bf16.msra.mxu1 %v1221_v34  ;;  %v1263_v34 = vpack.c.bf16 %v570_v32, %v568_v31  ;;  %v772_v31 = vld [vmem:[#allocation11 + $0x80] sm:$0xff]  ;;  %v774_v32 = vld [vmem:[#allocation11 + $0x90] sm:$0xff] }
  0xfa   : > { %1224 = vmatprep.subr.bf16.mxu1 %v1223_v35  ;;  %v567_v35 = vld [vmem:[#allocation8 + $0x140] sm:$0xff] }
  0xfb   : > { %v1265_v39 = vpack.c.bf16 %v569_v36, %v567_v35  ;;  %v1305_v35 = vpack.c.bf16 %v774_v32, %v772_v31  ;;  %v819_v31 = vld [vmem:[#allocation11 + $0x1f8] sm:$0xff] }
  0xfc   : > { %515 = vmatmul.mubr.f32.vlgmr.msra.gmra.mrb[0].mxu1 %v2126_v40 }
  0xfd   : > { %1226 = vmatpush1.bf16.msra.mxu1 %v1225_v42  ;;  %520 = vmatprep.mubr.f32.mxu1 %v2129_v46  ;;  %v1267_v42 = vpack.c.bf16 %v574_v38, %v572_v37  ;;  %v776_v37 = vld [vmem:[#allocation11 + $0xa0] sm:$0xff]  ;;  %v778_v38 = vld [vmem:[#allocation11 + $0xb0] sm:$0xff] }
  0xfe   : > { %1228 = vmatprep.subr.bf16.mxu1 %v1227_v43  ;;  %v571_v43 = vld [vmem:[#allocation8 + $0x160] sm:$0xff] }
  0xff   : > { %v1269_v48 = vpack.c.bf16 %v573_v44, %v571_v43  ;;  %v1309_v43 = vpack.c.bf16 %v778_v38, %v776_v37  ;;  %v695_v37 = vld [vmem:[#allocation10 + $0x18] sm:$0xff] }
 0x100   : > { %521 = vmatmul.mubr.f32.gmra.mrb[2].mxu1 %v2134_v50 }
 0x101   : > { %1230 = vmatpush1.bf16.msra.mxu1 %v1229_v49  ;;  %655 = vmatprep.mubr.f32.mxu1 %v2122_v41  ;;  %v549_v41 = vld [vmem:[#allocation8 + $0xb0] sm:$0xff]  ;;  %v1271_v49 = vpack.c.bf16 %v578_v47, %v576_v45  ;;  %v780_v45 = vld [vmem:[#allocation11 + $0xc0] sm:$0xff] }
 0x102   : > { %1232 = vmatprep.subr.bf16.mxu1 %v1231_v51  ;;  %v1245_v9 = vpack.c.bf16 %v549_v41, %v547_v6  ;;  %v575_v51 = vld [vmem:[#allocation8 + $0x180] sm:$0xff]  ;;  %v589_v6 = vld [vmem:[#allocation8 + $0x1f0] sm:$0xff] }
 0x103   : > { %v1273_v55 = vpack.c.bf16 %v577_v52, %v575_v51  ;;  %v782_v47 = vld [vmem:[#allocation11 + $0xd0] sm:$0xff] }
 0x104   : > { %v1313_v51 = vpack.c.bf16 %v782_v47, %v780_v45  ;;  %v382_v45 = vld [vmem:[#allocation5 + $0x20] sm:$0xff] }
 0x105   : > { %1234 = vmatpush1.bf16.msra.mxu1 %v1233_v56  ;;  %v1275_v56 = vpack.c.bf16 %v582_v54, %v580_v53  ;;  %v784_v53 = vld [vmem:[#allocation11 + $0xe0] sm:$0xff]  ;;  %v786_v54 = vld [vmem:[#allocation11 + $0xf0] sm:$0xff] }
 0x106   : > { %1236 = vmatprep.subr.bf16.mxu1 %v1235_v57  ;;  %v579_v57 = vld [vmem:[#allocation8 + $0x1a0] sm:$0xff] }
 0x107   : > { %v1277_v61 = vpack.c.bf16 %v581_v58, %v579_v57  ;;  %v1317_v57 = vpack.c.bf16 %v786_v54, %v784_v53  ;;  %v381_v53 = vld [vmem:[#allocation5 + $0x18] sm:$0xff] }
 0x109   : > { %1238 = vmatpush1.bf16.msra.mxu1 %v1237_v62  ;;  %v1279_v62 = vpack.c.bf16 %v586_v60, %v584_v59  ;;  %v788_v59 = vld [vmem:[#allocation11 + $0x100] sm:$0xff]  ;;  %v790_v60 = vld [vmem:[#allocation11 + $0x110] sm:$0xff] }
 0x10a   : > { %1240 = vmatprep.subr.bf16.mxu1 %v1239_v63  ;;  %v583_v63 = vld [vmem:[#allocation8 + $0x1c0] sm:$0xff] }
 0x10b   : > { %v1281_v3 = vpack.c.bf16 %v585_v0, %v583_v63  ;;  %v1321_v63 = vpack.c.bf16 %v790_v60, %v788_v59  ;;  %v692_v59 = vld [vmem:[#allocation10] sm:$0xff]  ;;  %v694_v60 = vld [vmem:[#allocation10 + $0x10] sm:$0xff] }
 0x10d   : > { %1242 = vmatpush1.bf16.msra.mxu1 %v1241_v4  ;;  %v1283_v4 = vpack.c.bf16 %v590_v2, %v588_v1  ;;  %v792_v1 = vld [vmem:[#allocation11 + $0x120] sm:$0xff]  ;;  %v794_v2 = vld [vmem:[#allocation11 + $0x130] sm:$0xff] }
 0x10e   : > { %1244 = vmatprep.subr.bf16.mxu1 %v1243_v5  ;;  %v587_v5 = vld [vmem:[#allocation8 + $0x1e0] sm:$0xff] }
 0x10f   : > { %v1285_v41 = vpack.c.bf16 %v589_v6, %v587_v5  ;;  %v1325_v5 = vpack.c.bf16 %v794_v2, %v792_v1  ;;  %v697_v2 = vld [vmem:[#allocation10 + $0x28] sm:$0xff] }
 0x111   : > { %1246 = vmatpush1.bf16.msra.mxu1 %v1245_v9  ;;  %v756_v9 = vld [vmem:[#allocation11] sm:$0xff] }
 0x112   : > { %1248 = vmatprep.subr.bf16.mxu1 %v1247_v10  ;;  %v1287_v10 = vpack.c.bf16 %v759_v8, %v757_v7  ;;  %v1289_v14 = vpack.c.bf16 %v758_v11, %v756_v9  ;;  %v798_v7 = vld [vmem:[#allocation11 + $0x150] sm:$0xff]  ;;  %v801_v8 = vld [vmem:[#allocation11 + $0x168] sm:$0xff]  ;;  %v803_v9 = vld [vmem:[#allocation11 + $0x178] sm:$0xff] }
 0x113   : > { %v1331_v11 = vpack.c.bf16 %v803_v9, %v801_v8 }
 0x114   : > { %1288 = vmatprep.subr.bf16.mxu0 %v1287_v10 }
 0x115   : > { %1250 = vmatpush1.bf16.msra.mxu1 %v1249_v15  ;;  %v1291_v15 = vpack.c.bf16 %v763_v13, %v761_v12  ;;  %1290 = vmatpush1.bf16.msra.mxu0 %v1289_v14  ;;  %v800_v12 = vld [vmem:[#allocation11 + $0x160] sm:$0xff]  ;;  %v802_v13 = vld [vmem:[#allocation11 + $0x170] sm:$0xff]  ;;  %v805_v14 = vld [vmem:[#allocation11 + $0x188] sm:$0xff] }
 0x116   : > { %1252 = vmatprep.subr.bf16.mxu1 %v1251_v16  ;;  %v760_v16 = vld [vmem:[#allocation11 + $0x20] sm:$0xff] }
 0x117   : > { %1292 = vmatprep.subr.bf16.mxu0 %v1291_v15  ;;  %v807_v15 = vld [vmem:[#allocation11 + $0x198] sm:$0xff] }
 0x119   : > { %1254 = vmatpush1.bf16.msra.mxu1 %v1253_v21  ;;  %v769_v21 = vld [vmem:[#allocation11 + $0x68] sm:$0xff] }
 0x11a   : > { %1256 = vmatprep.subr.bf16.mxu1 %v1255_v22  ;;  %v771_v22 = vld [vmem:[#allocation11 + $0x78] sm:$0xff] }
 0x11b   : > { %v1299_v24 = vpack.c.bf16 %v771_v22, %v769_v21  ;;  %v808_v21 = vld [vmem:[#allocation11 + $0x1a0] sm:$0xff]  ;;  %v810_v22 = vld [vmem:[#allocation11 + $0x1b0] sm:$0xff] }
 0x11c   : > { %v1341_v25 = vpack.c.bf16 %v810_v22, %v808_v21 }
 0x11d   : > { %1258 = vmatpush1.bf16.msra.mxu1 %v1257_v27  ;;  %v773_v27 = vld [vmem:[#allocation11 + $0x88] sm:$0xff] }
 0x11e   : > { %1260 = vmatprep.subr.bf16.mxu1 %v1259_v28  ;;  %v775_v28 = vld [vmem:[#allocation11 + $0x98] sm:$0xff] }
 0x11f   : > { %v1303_v30 = vpack.c.bf16 %v775_v28, %v773_v27  ;;  %v812_v27 = vld [vmem:[#allocation11 + $0x1c0] sm:$0xff]  ;;  %v814_v28 = vld [vmem:[#allocation11 + $0x1d0] sm:$0xff] }
 0x121   : > { %1262 = vmatpush1.bf16.msra.mxu1 %v1261_v33  ;;  %v777_v33 = vld [vmem:[#allocation11 + $0xa8] sm:$0xff] }
 0x122   : > { %1264 = vmatprep.subr.bf16.mxu1 %v1263_v34  ;;  %v779_v34 = vld [vmem:[#allocation11 + $0xb8] sm:$0xff] }
 0x123   : > { %v1307_v36 = vpack.c.bf16 %v779_v34, %v777_v33  ;;  %v816_v33 = vld [vmem:[#allocation11 + $0x1e0] sm:$0xff]  ;;  %v818_v34 = vld [vmem:[#allocation11 + $0x1f0] sm:$0xff] }
 0x125   : > { %1266 = vmatpush1.bf16.msra.mxu1 %v1265_v39  ;;  %v781_v39 = vld [vmem:[#allocation11 + $0xc8] sm:$0xff] }
 0x126   : > { %1268 = vmatprep.subr.bf16.mxu1 %v1267_v42  ;;  %v783_v42 = vld [vmem:[#allocation11 + $0xd8] sm:$0xff] }
 0x127   : > { %v1311_v44 = vpack.c.bf16 %v783_v42, %v781_v39  ;;  %v378_v39 = vld [vmem:[#allocation5] sm:$0xff] }
 0x129   : > { %1270 = vmatpush1.bf16.msra.mxu1 %v1269_v48  ;;  %v785_v48 = vld [vmem:[#allocation11 + $0xe8] sm:$0xff] }
 0x12a   : > { %1272 = vmatprep.subr.bf16.mxu1 %v1271_v49  ;;  %v787_v49 = vld [vmem:[#allocation11 + $0xf8] sm:$0xff] }
 0x12b   : > { %v1315_v52 = vpack.c.bf16 %v787_v49, %v785_v48 }
 0x12d   : > { %1274 = vmatpush1.bf16.msra.mxu1 %v1273_v55  ;;  %v789_v55 = vld [vmem:[#allocation11 + $0x108] sm:$0xff] }
 0x12e   : > { %1276 = vmatprep.subr.bf16.mxu1 %v1275_v56  ;;  %v791_v56 = vld [vmem:[#allocation11 + $0x118] sm:$0xff] }
 0x12f   : > { %v1319_v58 = vpack.c.bf16 %v791_v56, %v789_v55 }
 0x131   : > { %1278 = vmatpush1.bf16.msra.mxu1 %v1277_v61  ;;  %v793_v61 = vld [vmem:[#allocation11 + $0x128] sm:$0xff] }
 0x132   : > { %1280 = vmatprep.subr.bf16.mxu1 %v1279_v62  ;;  %v795_v62 = vld [vmem:[#allocation11 + $0x138] sm:$0xff] }
 0x133   : > { %v1323_v0 = vpack.c.bf16 %v795_v62, %v793_v61 }
 0x135   : > { %1282 = vmatpush1.bf16.msra.mxu1 %v1281_v3  ;;  %v797_v3 = vld [vmem:[#allocation11 + $0x148] sm:$0xff] }
 0x136   : > { %1284 = vmatprep.subr.bf16.mxu1 %v1283_v4  ;;  %v799_v4 = vld [vmem:[#allocation11 + $0x158] sm:$0xff] }
 0x137   : > { %v1327_v6 = vpack.c.bf16 %v799_v4, %v797_v3  ;;  %v699_v3 = vld [vmem:[#allocation10 + $0x38] sm:$0xff] }
 0x139   : > { %1286 = vmatpush1.bf16.msra.mxu1 %v1285_v41  ;;  %v796_v41 = vld [vmem:[#allocation11 + $0x140] sm:$0xff] }
 0x13a   : > { %v1329_v10 = vpack.c.bf16 %v798_v7, %v796_v41  ;;  %v385_v41 = vld [vmem:[#allocation5 + $0x38] sm:$0xff] }
 0x13c   : > { %656 = vmatmul.mubr.f32.vlgmr.msra.gmra.mrb[4].mxu1 %v2126_v40  ;;  %v1293_v40 = vpack.c.bf16 %v762_v17, %v760_v16  ;;  %v1333_v16 = vpack.c.bf16 %v802_v13, %v800_v12  ;;  %v1335_v17 = vpack.c.bf16 %v807_v15, %v805_v14  ;;  %v1355_v15 = vpack.c.bf16 %v699_v3, %v697_v2  ;;  %v725_v2 = vld [vmem:[#allocation10 + $0x108] sm:$0xff]  ;;  %v727_v3 = vld [vmem:[#allocation10 + $0x118] sm:$0xff] }
 0x13d   : > { %661 = vmatprep.mubr.f32.mxu1 %v2129_v46  ;;  %v1295_v46 = vpack.c.bf16 %v767_v19, %v765_v18  ;;  %v804_v18 = vld [vmem:[#allocation11 + $0x180] sm:$0xff]  ;;  %v806_v19 = vld [vmem:[#allocation11 + $0x190] sm:$0xff] }
 0x13e   : > { %1294 = vmatpush1.bf16.msra.mxu0 %v1293_v40  ;;  %v809_v40 = vld [vmem:[#allocation11 + $0x1a8] sm:$0xff] }
 0x13f   : > { %1296 = vmatprep.subr.bf16.mxu0 %v1295_v46  ;;  %v811_v46 = vld [vmem:[#allocation11 + $0x1b8] sm:$0xff] }
 0x140   : > { %662 = vmatmul.mubr.f32.gmra.mrb[6].mxu1 %v2134_v50  ;;  %v766_v50 = vld [vmem:[#allocation11 + $0x50] sm:$0xff] }
 0x141   : > { %v1297_v23 = vpack.c.bf16 %v766_v50, %v764_v20  ;;  %v1337_v20 = vpack.c.bf16 %v806_v19, %v804_v18  ;;  %v1339_v50 = vpack.c.bf16 %v811_v46, %v809_v40 }
 0x143   : > { %1298 = vmatpush1.bf16.msra.mxu0 %v1297_v23  ;;  %v813_v23 = vld [vmem:[#allocation11 + $0x1c8] sm:$0xff] }
 0x144   : > { %1300 = vmatprep.subr.bf16.mxu0 %v1299_v24  ;;  %v815_v24 = vld [vmem:[#allocation11 + $0x1d8] sm:$0xff] }
 0x145   : > { %v1343_v26 = vpack.c.bf16 %v815_v24, %v813_v23 }
 0x147   : > { %1302 = vmatpush1.bf16.msra.mxu0 %v1301_v29  ;;  %v1345_v29 = vpack.c.bf16 %v814_v28, %v812_v27  ;;  %v700_v27 = vld [vmem:[#allocation10 + $0x40] sm:$0xff]  ;;  %v702_v28 = vld [vmem:[#allocation10 + $0x50] sm:$0xff] }
 0x148   : > { %1304 = vmatprep.subr.bf16.mxu0 %v1303_v30  ;;  %v817_v30 = vld [vmem:[#allocation11 + $0x1e8] sm:$0xff] }
 0x149   : > { %v1347_v32 = vpack.c.bf16 %v819_v31, %v817_v30  ;;  %v707_v30 = vld [vmem:[#allocation10 + $0x78] sm:$0xff]  ;;  %v1361_v31 = vpack.c.bf16 %v702_v28, %v700_v27  ;;  %v738_v27 = vld [vmem:[#allocation10 + $0x170] sm:$0xff]  ;;  %v741_v28 = vld [vmem:[#allocation10 + $0x188] sm:$0xff] }
 0x14b   : > { %1306 = vmatpush1.bf16.msra.mxu0 %v1305_v35  ;;  %v1349_v35 = vpack.c.bf16 %v818_v34, %v816_v33  ;;  %v704_v33 = vld [vmem:[#allocation10 + $0x60] sm:$0xff]  ;;  %v706_v34 = vld [vmem:[#allocation10 + $0x70] sm:$0xff] }
 0x14c   : > { %1308 = vmatprep.subr.bf16.mxu0 %v1307_v36  ;;  %v693_v36 = vld [vmem:[#allocation10 + $0x8] sm:$0xff] }
 0x14d   : > { %v1351_v38 = vpack.c.bf16 %v695_v37, %v693_v36  ;;  %v711_v36 = vld [vmem:[#allocation10 + $0x98] sm:$0xff]  ;;  %v1365_v37 = vpack.c.bf16 %v706_v34, %v704_v33  ;;  %v742_v33 = vld [vmem:[#allocation10 + $0x190] sm:$0xff]  ;;  %v745_v34 = vld [vmem:[#allocation10 + $0x1a8] sm:$0xff] }
 0x14f   : > { %1310 = vmatpush1.bf16.msra.mxu0 %v1309_v43 }
 0x150   : > { %1312 = vmatprep.subr.bf16.mxu0 %v1311_v44 }
 0x153   : > { %1314 = vmatpush1.bf16.msra.mxu0 %v1313_v51  ;;  %v380_v51 = vld [vmem:[#allocation5 + $0x10] sm:$0xff] }
 0x154   : > { %1316 = vmatprep.subr.bf16.mxu0 %v1315_v52  ;;  %v379_v52 = vld [vmem:[#allocation5 + $0x8] sm:$0xff] }
 0x157   : > { %1318 = vmatpush1.bf16.msra.mxu0 %v1317_v57 }
 0x158   : > { %1320 = vmatprep.subr.bf16.mxu0 %v1319_v58 }
 0x15b   : > { %1322 = vmatpush1.bf16.msra.mxu0 %v1321_v63  ;;  %v384_v63 = vld [vmem:[#allocation5 + $0x30] sm:$0xff] }
 0x15c   : > { %1324 = vmatprep.subr.bf16.mxu0 %v1323_v0 }
 0x15f   : > { %1326 = vmatpush1.bf16.msra.mxu0 %v1325_v5 }
 0x160   : > { %1328 = vmatprep.subr.bf16.mxu0 %v1327_v6  ;;  %v383_v6 = vld [vmem:[#allocation5 + $0x28] sm:$0xff] }
 0x163   : > { %1330 = vmatpush1.bf16.msra.mxu0 %v1329_v10  ;;  %v1353_v10 = vpack.c.bf16 %v694_v60, %v692_v59  ;;  %v718_v59 = vld [vmem:[#allocation10 + $0xd0] sm:$0xff]  ;;  %v721_v60 = vld [vmem:[#allocation10 + $0xe8] sm:$0xff] }
 0x164   : > { %1332 = vmatprep.subr.bf16.mxu0 %v1331_v11 }
 0x167   : > { %1334 = vmatpush1.bf16.msra.mxu0 %v1333_v16  ;;  %v696_v16 = vld [vmem:[#allocation10 + $0x20] sm:$0xff] }
 0x168   : > { %1336 = vmatprep.subr.bf16.mxu0 %v1335_v17  ;;  %v698_v17 = vld [vmem:[#allocation10 + $0x30] sm:$0xff] }
 0x16b   : > { %1338 = vmatpush1.bf16.msra.mxu0 %v1337_v20  ;;  %v701_v20 = vld [vmem:[#allocation10 + $0x48] sm:$0xff] }
 0x16c   : > { %1340 = vmatprep.subr.bf16.mxu0 %v1339_v50  ;;  %v703_v50 = vld [vmem:[#allocation10 + $0x58] sm:$0xff] }
 0x16f   : > { %1342 = vmatpush1.bf16.msra.mxu0 %v1341_v25  ;;  %v1357_v25 = vpack.c.bf16 %v698_v17, %v696_v16  ;;  %v735_v16 = vld [vmem:[#allocation10 + $0x158] sm:$0xff] }
 0x170   : > { %1344 = vmatprep.subr.bf16.mxu0 %v1343_v26  ;;  %v1359_v26 = vpack.c.bf16 %v703_v50, %v701_v20  ;;  %v734_v20 = vld [vmem:[#allocation10 + $0x150] sm:$0xff]  ;;  %v737_v50 = vld [vmem:[#allocation10 + $0x168] sm:$0xff] }
 0x173   : > { %1346 = vmatpush1.bf16.msra.mxu0 %v1345_v29  ;;  %v705_v29 = vld [vmem:[#allocation10 + $0x68] sm:$0xff] }
 0x174   : > { %1348 = vmatprep.subr.bf16.mxu0 %v1347_v32  ;;  %v1363_v32 = vpack.c.bf16 %v707_v30, %v705_v29  ;;  %v743_v29 = vld [vmem:[#allocation10 + $0x198] sm:$0xff] }
 0x177   : > { %1350 = vmatpush1.bf16.msra.mxu0 %v1349_v35  ;;  %v709_v35 = vld [vmem:[#allocation10 + $0x88] sm:$0xff] }
 0x178   : > { %1352 = vmatprep.subr.bf16.mxu0 %v1351_v38  ;;  %v1367_v38 = vpack.c.bf16 %v711_v36, %v709_v35  ;;  %v747_v35 = vld [vmem:[#allocation10 + $0x1b8] sm:$0xff] }
 0x1cf   : > { %v516_v42 = vpop.f32.mrb[0].mxu1 }
 0x1d0   : > { %v2141_v43 = vmul.f32 %v516_v42, %v378_v39  ;;  %v518_v44 = vpop.f32.mrb[1].mxu1  ;;  %v680_v55 = vmul.f32 %v516_v42, %v380_v51  ;;  %v710_v42 = vld [vmem:[#allocation10 + $0x90] sm:$0xff] }
 0x1d1   : > { %v669_v61 = vmul.f32 %v518_v44, %v379_v52  ;;  %v681_v62 = vmul.f32 %v518_v44, %v381_v53  ;;  %v713_v44 = vld [vmem:[#allocation10 + $0xa8] sm:$0xff] }
 0x1d3   : > { %v522_v47 = vpop.f32.mrb[2].mxu1 }
 0x1d4   : > { %v2143_v48 = vmul.f32 %v522_v47, %v382_v45  ;;  %v524_v49 = vpop.f32.mrb[3].mxu1  ;;  %v682_v11 = vmul.f32 %v522_v47, %v384_v63 }
 0x1d5   : > { %v2151_v18 = vmul.f32 %v524_v49, %v383_v6  ;;  %v683_v40 = vmul.f32 %v524_v49, %v385_v41 }
 0x20f   : > { %v657_v54 = vpop.f32.mrb[4].mxu1 }
 0x210   : > { %v2145_v56 = vmul.f32 %v657_v54, %v380_v51  ;;  %v684_v57 = vmul.f32 %v657_v54, %v378_v39  ;;  %v659_v58 = vpop.f32.mrb[5].mxu1  ;;  %v708_v39 = vld [vmem:[#allocation10 + $0x80] sm:$0xff]  ;;  %v719_v54 = vld [vmem:[#allocation10 + $0xd8] sm:$0xff] }
 0x211   : > { %v673_v0 = vmul.f32 %v659_v58, %v381_v53  ;;  %v685_v1 = vmul.f32 %v659_v58, %v379_v52  ;;  %v1369_v47 = vpack.c.bf16 %v710_v42, %v708_v39  ;;  %v712_v51 = vld [vmem:[#allocation10 + $0xa0] sm:$0xff]  ;;  %v714_v52 = vld [vmem:[#allocation10 + $0xb0] sm:$0xff]  ;;  %v717_v53 = vld [vmem:[#allocation10 + $0xc8] sm:$0xff] }
 0x212   : > { %v676_v4 = vsub.f32 %v2141_v43, %v2145_v56  ;;  %v688_v5 = vadd.f32 %v684_v57, %v680_v55  ;;  %v1373_v55 = vpack.c.bf16 %v714_v52, %v712_v51  ;;  %v1375_v57 = vpack.c.bf16 %v719_v54, %v717_v53  ;;  %v716_v58 = vld [vmem:[#allocation10 + $0xc0] sm:$0xff]  ;;  %v746_v39 = vld [vmem:[#allocation10 + $0x1b0] sm:$0xff]  ;;  %v749_v42 = vld [vmem:[#allocation10 + $0x1c8] sm:$0xff] }
 0x213   : > { %v677_v7 = vsub.f32 %v669_v61, %v673_v0  ;;  %v663_v8 = vpop.f32.mrb[6].mxu1  ;;  %v689_v9 = vadd.f32 %v685_v1, %v681_v62  ;;  %v723_v61 = vld [vmem:[#allocation10 + $0xf8] sm:$0xff]  ;;  %v1377_v62 = vpack.c.bf16 %v718_v59, %v716_v58  ;;  %v720_v0 = vld [vmem:[#allocation10 + $0xe0] sm:$0xff]  ;;  %v722_v1 = vld [vmem:[#allocation10 + $0xf0] sm:$0xff] }
 0x214   : > { %v2149_v12 = vmul.f32 %v663_v8, %v384_v63  ;;  %v686_v13 = vmul.f32 %v663_v8, %v382_v45  ;;  %v665_v14 = vpop.f32.mrb[7].mxu1  ;;  %v715_v45 = vld [vmem:[#allocation10 + $0xb8] sm:$0xff]  ;;  %v1379_v63 = vpack.c.bf16 %v723_v61, %v721_v60  ;;  %v729_v8 = vld [vmem:[#allocation10 + $0x128] sm:$0xff]  ;;  %v750_v51 = vld [vmem:[#allocation10 + $0x1d0] sm:$0xff] }
 0x215   : > { %v2153_v19 = vmul.f32 %v665_v14, %v385_v41  ;;  %v687_v46 = vmul.f32 %v665_v14, %v383_v6  ;;  %884 = vmatprep.mubr.f32.mxu0 %v689_v9  ;;  %v1371_v49 = vpack.c.bf16 %v715_v45, %v713_v44  ;;  %v1383_v6 = vpack.c.bf16 %v727_v3, %v725_v2  ;;  %v724_v41 = vld [vmem:[#allocation10 + $0x100] sm:$0xff]  ;;  %v731_v9 = vld [vmem:[#allocation10 + $0x138] sm:$0xff]  ;;  %v730_v14 = vld [vmem:[#allocation10 + $0x130] sm:$0xff] }
 0x216   : > { %v678_v21 = vsub.f32 %v2143_v48, %v2149_v12  ;;  %v690_v22 = vadd.f32 %v686_v13, %v682_v11  ;;  %885 = vmatmul.mubr.f32.vlgmr.msra.gmra.mrb[0].mxu0 %v688_v5  ;;  %v1381_v5 = vpack.c.bf16 %v722_v1, %v720_v0  ;;  %v1387_v11 = vpack.c.bf16 %v731_v9, %v729_v8  ;;  %v728_v13 = vld [vmem:[#allocation10 + $0x120] sm:$0xff]  ;;  %v751_v44 = vld [vmem:[#allocation10 + $0x1d8] sm:$0xff]  ;;  %v753_v52 = vld [vmem:[#allocation10 + $0x1e8] sm:$0xff] }
 0x217   : > { %v679_v23 = vsub.f32 %v2151_v18, %v2153_v19  ;;  %v691_v24 = vadd.f32 %v687_v46, %v683_v40  ;;  %1354 = vmatpush1.bf16.msra.mxu0 %v1353_v10  ;;  %v1389_v17 = vpack.c.bf16 %v730_v14, %v728_v13  ;;  %v732_v46 = vld [vmem:[#allocation10 + $0x140] sm:$0xff]  ;;  %v755_v53 = vld [vmem:[#allocation10 + $0x1f8] sm:$0xff]  ;;  %v754_v58 = vld [vmem:[#allocation10 + $0x1f0] sm:$0xff] }
 0x218   : > { %1356 = vmatprep.subr.bf16.mxu0 %v1355_v15  ;;  %v733_v15 = vld [vmem:[#allocation10 + $0x148] sm:$0xff] }
 0x219   : > { %890 = vmatprep.mubr.f32.mxu0 %v691_v24  ;;  %v1391_v40 = vpack.c.bf16 %v735_v16, %v733_v15  ;;  %v1393_v24 = vpack.c.bf16 %v734_v20, %v732_v46 }
 0x21a   : > { %891 = vmatmul.mubr.f32.gmra.mrb[2].mxu0 %v690_v22  ;;  %v739_v22 = vld [vmem:[#allocation10 + $0x178] sm:$0xff] }
 0x21b   : > { %1358 = vmatpush1.bf16.msra.mxu0 %v1357_v25  ;;  %961 = vmatprep.mubr.f32.mxu0 %v677_v7  ;;  %v726_v7 = vld [vmem:[#allocation10 + $0x110] sm:$0xff]  ;;  %v1395_v25 = vpack.c.bf16 %v739_v22, %v737_v50 }
 0x21c   : > { %1360 = vmatprep.subr.bf16.mxu0 %v1359_v26  ;;  %v1385_v10 = vpack.c.bf16 %v726_v7, %v724_v41  ;;  %v736_v26 = vld [vmem:[#allocation10 + $0x160] sm:$0xff] }
 0x21d   : > { %v1397_v30 = vpack.c.bf16 %v738_v27, %v736_v26 }
 0x21f   : > { %1362 = vmatpush1.bf16.msra.mxu0 %v1361_v31  ;;  %v1399_v31 = vpack.c.bf16 %v743_v29, %v741_v28 }
 0x220   : > { %1364 = vmatprep.subr.bf16.mxu0 %v1363_v32  ;;  %v740_v32 = vld [vmem:[#allocation10 + $0x180] sm:$0xff] }
 0x221   : > { %v1401_v36 = vpack.c.bf16 %v742_v33, %v740_v32 }
 0x223   : > { %1366 = vmatpush1.bf16.msra.mxu0 %v1365_v37  ;;  %v1403_v37 = vpack.c.bf16 %v747_v35, %v745_v34 }
 0x224   : > { %1368 = vmatprep.subr.bf16.mxu0 %v1367_v38  ;;  %v744_v38 = vld [vmem:[#allocation10 + $0x1a0] sm:$0xff] }
 0x225   : > { %v1405_v45 = vpack.c.bf16 %v746_v39, %v744_v38 }
 0x227   : > { %1370 = vmatpush1.bf16.msra.mxu0 %v1369_v47  ;;  %v1407_v47 = vpack.c.bf16 %v751_v44, %v749_v42 }
 0x228   : > { %1372 = vmatprep.subr.bf16.mxu0 %v1371_v49  ;;  %v748_v49 = vld [vmem:[#allocation10 + $0x1c0] sm:$0xff] }
 0x229   : > { %v1409_v54 = vpack.c.bf16 %v750_v51, %v748_v49 }
 0x22b   : > { %1374 = vmatpush1.bf16.msra.mxu0 %v1373_v55  ;;  %v1411_v55 = vpack.c.bf16 %v755_v53, %v753_v52 }
 0x22c   : > { %1376 = vmatprep.subr.bf16.mxu0 %v1375_v57  ;;  %v752_v57 = vld [vmem:[#allocation10 + $0x1e0] sm:$0xff] }
 0x22d   : > { %v1413_v59 = vpack.c.bf16 %v754_v58, %v752_v57 }
 0x22f   : > { %1378 = vmatpush1.bf16.msra.mxu0 %v1377_v62 }
 0x230   : > { %1380 = vmatprep.subr.bf16.mxu0 %v1379_v63 }
 0x233   : > { %1382 = vmatpush1.bf16.msra.mxu0 %v1381_v5 }
 0x234   : > { %1384 = vmatprep.subr.bf16.mxu0 %v1383_v6 }
 0x237   : > { %1386 = vmatpush1.bf16.msra.mxu0 %v1385_v10 }
 0x238   : > { %1388 = vmatprep.subr.bf16.mxu0 %v1387_v11 }
 0x23b   : > { %1390 = vmatpush1.bf16.msra.mxu0 %v1389_v17 }
 0x23c   : > { %1392 = vmatprep.subr.bf16.mxu0 %v1391_v40 }
 0x23f   : > { %1394 = vmatpush1.bf16.msra.mxu0 %v1393_v24 }
 0x240   : > { %1396 = vmatprep.subr.bf16.mxu0 %v1395_v25 }
 0x243   : > { %1398 = vmatpush1.bf16.msra.mxu0 %v1397_v30 }
 0x244   : > { %1400 = vmatprep.subr.bf16.mxu0 %v1399_v31 }
 0x247   : > { %1402 = vmatpush1.bf16.msra.mxu0 %v1401_v36 }
 0x248   : > { %1404 = vmatprep.subr.bf16.mxu0 %v1403_v37 }
 0x24b   : > { %1406 = vmatpush1.bf16.msra.mxu0 %v1405_v45 }
 0x24c   : > { %1408 = vmatprep.subr.bf16.mxu0 %v1407_v47 }
 0x24f   : > { %1410 = vmatpush1.bf16.msra.mxu0 %v1409_v54 }
 0x250   : > { %1412 = vmatprep.subr.bf16.mxu0 %v1411_v55 }
 0x253   : > { %1414 = vmatpush1.bf16.msra.mxu0 %v1413_v59 }
 0x256   : > { %962 = vmatmul.mubr.f32.vlgmr.msra.gmra.mrb[0].mxu0 %v676_v4 }
 0x257   : > { %967 = vmatprep.mubr.f32.mxu0 %v679_v23 }
 0x25a   : > { %968 = vmatmul.mubr.f32.gmra.mrb[2].mxu0 %v678_v21 }
 0x329   : > { %v963_v60 = vpop.f32.mrb[0].mxu0 }
 0x32a   : > { %974 = vst [vmem:[%s370_s28] sm:$0xff] %v963_v60  ;;  %v965_v61 = vpop.f32.mrb[1].mxu0 }
 0x32b   : > { %975 = vst [vmem:[%s370_s28 + $0x8] sm:$0xff] %v965_v61 }
 0x32d   : > { %v969_v43 = vpop.f32.mrb[2].mxu0 }
 0x32e   : > { %976 = vst [vmem:[%s370_s28 + $0x10] sm:$0xff] %v969_v43  ;;  %v971_v48 = vpop.f32.mrb[3].mxu0 }
 0x32f   : > { %977 = vst [vmem:[%s370_s28 + $0x18] sm:$0xff] %v971_v48 }
 0x330   : > { %1721 = shalt.err (!%p1718_p8)
}
 0x331   : > { %s1722_s8 = scalar_lea.hbm %s2176_s9, 512  ;;  %s1726_s28 = scalar_lea.hbm %s2254_s12, 1024 }
 0x332   : > { %p1723_p3 = scmp.ne.s32.totalorder %s2176_s9, %s1722_s8  ;;  %p1727_p10 = scmp.lt.u32.totalorder %s2176_s9, %s2254_s12 }
 0x333   : > { %p1728_p1 = scmp.lt.u32.totalorder %s1726_s28, %s1722_s8  ;;  %p1730_p6 = scmp.lt.u32.totalorder %s1722_s8, %s2176_s9 }
 0x334   : > { %p1724_p7 = pnand %p1723_p3, %p2255_p2 }
 0x335   : > { %p1729_p13 = por %p1728_p1, %p1727_p10 }
 0x336   : > { %p1725_p9 = pneg %p1724_p7 }
 0x337   : > { %p1731_p4 = por %p1730_p6, %p1729_p13 }
 0x339   : > { %p1732_p5 = pnand %p1731_p4, %p1725_p9 }
 0x33b   : > { %1735 = shalt.err (!%p1732_p5)
}
 0x33c   : > { %s1815_s11 = smov 256   ;;  %s1816_s10 = smov 16  }
 0x33d   : > { %1441 = dma.vmem_to_hbm [thread:$0]  (%p2255_p2), %s2171_s29, 512, %s2176_s9, %s979_s19, %s1815_s11, %s1815_s11, %s1816_s10  }
 0x33e PF: > { %s1010_s24 = sand.u32 1, %s1782_s21   ;;  %p2256_p11 = scmp.ne.s32.totalorder %s2249_s17, 0 }
 0x33f   : > { %p2257_p12 = scmp.ge.s32.totalorder %s1802_s26, 2  ;;  %s1011_s13 = scalar_lea.sflag [#allocation4], %s1010_s24 }
 0x341   : > { %p1464_p0 = pnand %p2257_p12, %p2256_p11 }
 0x343   : > { %1777 = dma.done.wait (!%p1464_p0), %s1011_s13, 512  }
 0x344   : > { %1779 = vsyncadd (!%p1464_p0), %s1011_s13, 4294966784  ;;  %s25_s26 = sadd.s32 1, %s1802_s26   ;;  %s2258_s21 = smov %s1786_s22 }
 0x345   : > { %p22_p8 = scmp.ge.s32.totalorder %s25_s26, 4   ;;  %s2259_s22 = smov %s1790_s23 }
 0x346   : > { %s2260_s23 = smov %s2042_s15  ;;  %s2261_s24 = smov %s1798_s25 }
 0x347   : > { %s2262_s25 = smov %s2264_s16  ;;  %24 = sbr.rel (!%p22_p8) target bundleno = 11 (0xb), region = 110 }
 0x34e   :  { %1016 = vsyncpa [#allocation3], 1 }
 0x34f   :  { %1018 = vsyncpa [#allocation3 + $0x1], 1 }
 0x350   :  { %1019 = vsyncpa [#allocation6], 1 }
 0x351   :  { %1020 = vsyncpa [#allocation9], 1 }
 0x352   :  { %1021 = vsyncpa [#allocation12], 1 }
 0x353   :  { %1022 = vsyncpa [#allocation4], 1 }
 0x354   :  { %1024 = vsyncpa [#allocation4 + $0x1], 1 }

// kernel: tpu_custom_call.1
= control target key start
LH: loop header
LB: loop body
LE: loop exit
PB: predicated region body
PF: predicated region fallthrough
CT: control target
= control target key end

     0   :  { %s2225_s0 = inlined_call_operand.hbm [shape: f32[2,16,256], index: 0, kind: input, shape index: {}]   ;;  %s2226_s1 = inlined_call_operand.hbm [shape: f32[16,512], index: 1, kind: input, shape index: {}]   ;;  %s2227_s2 = inlined_call_operand.hbm [shape: f32[256,256], index: 2, kind: input, shape index: {}]   ;;  %s2228_s3 = inlined_call_operand.hbm [shape: f32[256,256], index: 3, kind: input, shape index: {}]   ;;  %s2229_s4 = inlined_call_operand.hbm [shape: f32[256,256], index: 4, kind: input, shape index: {}]   ;;  %s2230_s5 = inlined_call_operand.hbm [shape: f32[256,256], index: 5, kind: input, shape index: {}]   ;;  %s2231_s6 = inlined_call_operand.hbm [shape: f32[2,16,256], index: 6, kind: output, shape index: {}]  }
   0x1   :  { %2239 = sst [smem:[#allocation19_spill]] %s2231_s6 }
   0x2   :  { %11 = vsyncpa [#allocation3], 0 }
   0x3   :  { %13 = vsyncpa [#allocation3 + $0x1], 0 }
   0x4   :  { %14 = vsyncpa [#allocation6], 0 }
   0x5   :  { %15 = vsyncpa [#allocation9], 0 }
   0x6   :  { %16 = vsyncpa [#allocation12], 0 }
   0x7   :  { %17 = vsyncpa [#allocation4], 0 }
   0x8   :  { %19 = vsyncpa [#allocation4 + $0x1], 0  ;;  %s1852_s21 = smov 0   ;;  %s1854_s22 = smov 0  }
   0x9   :  { %s1856_s23 = smov 0   ;;  %s1858_s24 = smov 0  }
   0xa   :  { %s1860_s25 = smov 0   ;;  %s1862_s26 = smov 0  }
   0xb LB: > { %s2235_s27 = sadd.s32 4294967295, %s1802_s26   ;;  %p1134_p0 = scmp.ge.s32.totalorder %s1802_s26, 1  ;;  %s1802_s26 = sphi %s1862_s26, %s25_s26   ;;  %s1798_s25 = sphi %s1860_s25, %s2262_s25   ;;  %s1794_s24 = sphi %s1858_s24, %s2261_s24   ;;  %s1790_s23 = sphi %s1856_s23, %s2260_s23   ;;  %s1786_s22 = sphi %s1854_s22, %s2259_s22   ;;  %s1782_s21 = sphi %s1852_s21, %s2258_s21  }
   0xc   : > { %p1886_p1 = scmp.eq.s32.totalorder %s2235_s27, 0  ;;  %p208_p2 = scmp.lt.s32.totalorder %s1802_s26, 3 }
   0xd   : > { %s1804_s30 = smov [#allocation5]   ;;  %s1805_s9 = smov [#allocation8]  }
   0xe   : > { %s2240_s28 = scalar_select %p1886_p1, 1, 0 }
   0xf   : > { %p1891_p3 = pnand %p1134_p0, %p208_p2  ;;  %s224_s7 = sshll.u32 %s1804_s30, 4  ;;  %s225_s7 = int_to_ptr.vmem [resolvable:$true] %s224_s7 }
  0x10   : > { %s250_s10 = sshll.u32 %s1805_s9, 4  ;;  %s1538_s13 = scalar_lea.hbm %s2226_s1, 1024  ;;  %s251_s10 = int_to_ptr.vmem [resolvable:$true] %s250_s10 }
  0x11   : > { %s2241_s29 = scalar_select %p1891_p3, 1, 0 }
  0x12   : > { %p1443_p4 = pneg %p1891_p3  ;;  %p1539_p7 = scmp.ne.s32.totalorder %s2226_s1, %s1538_s13 }
  0x13   : > { %p1545_p11 = scmp.lt.u32.totalorder %s1538_s13, %s2226_s1 }
  0x14   : > { %p1900_p6 = pnand %p1443_p4, %p1886_p1 }
  0x16   : > { %p1912_p8 = pneg %p1900_p6 }
  0x18   : > { %p1541_p9 = pnand %p1912_p8, %p1539_p7 }
  0x1a   : > { %p1542_p10 = pneg %p1541_p9 }
  0x1c   : > { %p1547_p12 = pnand %p1545_p11, %p1542_p10 }
  0x1e   : > { %1550 = shalt.err (!%p1547_p12)
}
  0x1f   : > { %s1551_s19 = scalar_lea.vmem %s225_s7, 1024  ;;  %p1559_p4 = scmp.lt.s32.totalorder %s225_s7, %s225_s7 }
  0x20   : > { %p1552_p13 = scmp.ne.s32.totalorder %s225_s7, %s1551_s19  ;;  %p1560_p5 = scmp.lt.s32.totalorder %s1551_s19, %s1551_s19 }
  0x22   : > { %p1554_p0 = pnand %p1552_p13, %p1912_p8  ;;  %p1561_p3 = por %p1560_p5, %p1559_p4 }
  0x24   : > { %p1555_p2 = pneg %p1554_p0 }
  0x26   : > { %p1562_p1 = pnand %p1561_p3, %p1555_p2 }
  0x28   : > { %1565 = shalt.err (!%p1562_p1)
}
  0x29   : > { %s1806_s20 = smov 512   ;;  %s1807_s30 = smov 32  }
  0x2a   : > { %1446 = dma.hbm_to_vmem [thread:$0]  (!%p1900_p6), %s2226_s1, 1024, %s225_s7, [#allocation6], %s1806_s20, %s1806_s20, %s1807_s30  }
  0x2b   : > { %s1808_s12 = smov [#allocation7]   ;;  %s1566_s17 = scalar_lea.hbm %s2228_s3, 8192 }
  0x2c   : > { %s237_s13 = sshll.u32 %s1808_s12, 4  ;;  %p1567_p1 = scmp.ne.s32.totalorder %s2228_s3, %s1566_s17  ;;  %s238_s13 = int_to_ptr.vmem [resolvable:$true] %s237_s13 }
  0x2d   : > { %p1573_p7 = scmp.lt.u32.totalorder %s1566_s17, %s2228_s3 }
  0x2e   : > { %p1569_p3 = pnand %p1567_p1, %p1912_p8 }
  0x30   : > { %p1570_p5 = pneg %p1569_p3 }
  0x32   : > { %p1575_p9 = pnand %p1573_p7, %p1570_p5 }
  0x34   : > { %1578 = shalt.err (!%p1575_p9)
}
  0x35   : > { %s1579_s7 = scalar_lea.vmem %s251_s10, 8192  ;;  %p1587_p13 = scmp.lt.s32.totalorder %s251_s10, %s251_s10 }
  0x36   : > { %p1580_p10 = scmp.ne.s32.totalorder %s251_s10, %s1579_s7  ;;  %p1588_p0 = scmp.lt.s32.totalorder %s1579_s7, %s1579_s7 }
  0x38   : > { %p1582_p11 = pnand %p1580_p10, %p1912_p8  ;;  %p1589_p2 = por %p1588_p0, %p1587_p13 }
  0x3a   : > { %p1583_p12 = pneg %p1582_p11 }
  0x3c   : > { %p1590_p4 = pnand %p1589_p2, %p1583_p12 }
  0x3e   : > { %1593 = shalt.err (!%p1590_p4)
}
  0x3f   : > { %s2237_s20 = smov 256   ;;  %s1810_s30 = smov 16  }
  0x40   : > { %1452 = dma.hbm_to_vmem [thread:$0]  (!%p1900_p6), %s2228_s3, 8192, %s251_s10, [#allocation9], %s2237_s20, %s2237_s20, %s1810_s30  }
  0x41   : > { %s1594_s12 = scalar_lea.hbm %s2227_s2, 8192 }
  0x42   : > { %p1595_p1 = scmp.ne.s32.totalorder %s2227_s2, %s1594_s12  ;;  %p1601_p7 = scmp.lt.u32.totalorder %s1594_s12, %s2227_s2 }
  0x44   : > { %p1597_p3 = pnand %p1595_p1, %p1912_p8 }
  0x46   : > { %p1598_p5 = pneg %p1597_p3 }
  0x48   : > { %p1603_p9 = pnand %p1601_p7, %p1598_p5 }
  0x4a   : > { %1606 = shalt.err (!%p1603_p9)
}
  0x4b   : > { %s1607_s19 = scalar_lea.vmem %s238_s13, 8192  ;;  %p1615_p13 = scmp.lt.s32.totalorder %s238_s13, %s238_s13 }
  0x4c   : > { %p1608_p10 = scmp.ne.s32.totalorder %s238_s13, %s1607_s19  ;;  %p1616_p0 = scmp.lt.s32.totalorder %s1607_s19, %s1607_s19 }
  0x4e   : > { %p1610_p11 = pnand %p1608_p10, %p1912_p8  ;;  %p1617_p2 = por %p1616_p0, %p1615_p13 }
  0x50   : > { %p1611_p12 = pneg %p1610_p11 }
  0x52   : > { %p1618_p4 = pnand %p1617_p2, %p1611_p12 }
  0x54   : > { %1621 = shalt.err (!%p1618_p4)
}
  0x55   : > { %1449 = dma.hbm_to_vmem [thread:$0]  (!%p1900_p6), %s2227_s2, 8192, %s238_s13, [#allocation6], %s2237_s20, %s2237_s20, %s1810_s30  }
  0x56   : > { %s1811_s6 = smov [#allocation10]   ;;  %s1812_s9 = smov [#allocation11]  }
  0x57   : > { %s263_s27 = sshll.u32 %s1811_s6, 4  ;;  %s276_s11 = sshll.u32 %s1812_s9, 4  ;;  %s264_s27 = int_to_ptr.vmem [resolvable:$true] %s263_s27  ;;  %s277_s11 = int_to_ptr.vmem [resolvable:$true] %s276_s11 }
  0x58   : > { %s1622_s15 = scalar_lea.hbm %s2229_s4, 8192 }
  0x59   : > { %p1623_p1 = scmp.ne.s32.totalorder %s2229_s4, %s1622_s15  ;;  %p1629_p7 = scmp.lt.u32.totalorder %s1622_s15, %s2229_s4 }
  0x5b   : > { %p1625_p3 = pnand %p1623_p1, %p1912_p8 }
  0x5d   : > { %p1626_p5 = pneg %p1625_p3 }
  0x5f   : > { %p1631_p9 = pnand %p1629_p7, %p1626_p5 }
  0x61   : > { %1634 = shalt.err (!%p1631_p9)
}
  0x62   : > { %s1635_s13 = scalar_lea.vmem %s264_s27, 8192  ;;  %p1643_p13 = scmp.lt.s32.totalorder %s264_s27, %s264_s27 }
  0x63   : > { %p1636_p10 = scmp.ne.s32.totalorder %s264_s27, %s1635_s13  ;;  %p1644_p0 = scmp.lt.s32.totalorder %s1635_s13, %s1635_s13 }
  0x65   : > { %p1638_p11 = pnand %p1636_p10, %p1912_p8  ;;  %p1645_p2 = por %p1644_p0, %p1643_p13 }
  0x67   : > { %p1639_p12 = pneg %p1638_p11 }
  0x69   : > { %p1646_p4 = pnand %p1645_p2, %p1639_p12 }
  0x6b   : > { %1649 = shalt.err (!%p1646_p4)
}
  0x6c   : > { %1455 = dma.hbm_to_vmem [thread:$0]  (!%p1900_p6), %s2229_s4, 8192, %s264_s27, [#allocation9], %s2237_s20, %s2237_s20, %s1810_s30  }
  0x6d   : > { %s1650_s14 = scalar_lea.hbm %s2230_s5, 8192 }
  0x6e   : > { %p1651_p1 = scmp.ne.s32.totalorder %s2230_s5, %s1650_s14  ;;  %p1657_p7 = scmp.lt.u32.totalorder %s1650_s14, %s2230_s5 }
  0x70   : > { %p1653_p3 = pnand %p1651_p1, %p1912_p8 }
  0x72   : > { %p1654_p5 = pneg %p1653_p3 }
  0x74   : > { %p1659_p9 = pnand %p1657_p7, %p1654_p5 }
  0x76   : > { %1662 = shalt.err (!%p1659_p9)
}
  0x77   : > { %s1663_s10 = scalar_lea.vmem %s277_s11, 8192  ;;  %p1671_p13 = scmp.lt.s32.totalorder %s277_s11, %s277_s11 }
  0x78   : > { %p1664_p10 = scmp.ne.s32.totalorder %s277_s11, %s1663_s10  ;;  %p1672_p0 = scmp.lt.s32.totalorder %s1663_s10, %s1663_s10 }
  0x7a   : > { %p1666_p11 = pnand %p1664_p10, %p1912_p8  ;;  %p1673_p2 = por %p1672_p0, %p1671_p13 }
  0x7c   : > { %p1667_p12 = pneg %p1666_p11 }
  0x7e   : > { %p1674_p4 = pnand %p1673_p2, %p1667_p12 }
  0x80   : > { %1677 = shalt.err (!%p1674_p4)
}
  0x81   : > { %1458 = dma.hbm_to_vmem [thread:$0]  (!%p1900_p6), %s2230_s5, 8192, %s277_s11, [#allocation12], %s2237_s20, %s2237_s20, %s1810_s30  }
  0x82   : > { %s1133_s8 = sadd.s32 4294967294, %s1802_s26   ;;  %s34_s16 = sadd.s32 1, %s1798_s25 }
  0x83   : > { %s46_s7 = sadd.s32 1, %s1790_s23  ;;  %p35_p8 = scmp.ge.s32.totalorder %s34_s16, 2 }
  0x84   : > { %p53_p1 = scmp.ne.s32.totalorder %s1790_s23, %s1786_s22  ;;  %p54_p3 = scmp.eq.s32.totalorder %s1802_s26, 0 }
  0x85   : > { %p59_p5 = scmp.ne.s32.totalorder %s1786_s22, %s1782_s21  ;;  %s2264_s16 = smov (%p35_p8, %s34_s16), 0 }
  0x86   : > { %p2022_p7 = por %p54_p3, %p53_p1  ;;  %p2245_p9 = scmp.ne.s32.totalorder %s2240_s28, 0 }
  0x87   : > { %s41_s9 = ssub.s32 %s1798_s25, %s2264_s16  ;;  %s2247_s12 = sadd.s32 4294967295, %s1802_s26  }
  0x88   : > { %p2028_p6 = por %p2245_p9, %p59_p5  ;;  %p195_p10 = scmp.eq.s32.totalorder %s2247_s12, 1 }
  0x89   : > { %p44_p11 = scmp.eq.s32.totalorder %s41_s9, 0  ;;  %p201_p12 = scmp.eq.s32.totalorder %s1133_s8, 1 }
  0x8a   : > { %p2036_p13 = por %p195_p10, %p53_p1  ;;  %p1472_p0 = scmp.lt.s32.totalorder %s1802_s26, 2 }
  0x8b   : > { %s2042_s15 = scalar_select %p44_p11, %s1790_s23, %s46_s7  }
  0x8c   : > { %s2248_s14 = scalar_select %p2036_p13, 1, 0 }
  0x8d   : > { %p2044_p2 = por %p201_p12, %p59_p5  ;;  %s290_s18 = sand.u32 1, %s1790_s23  }
  0x8e   : > { %s1141_s19 = sshll.u32 %s290_s18, 5  ;;  %s1157_s10 = sshll.u32 %s1798_s25, 9 }
  0x8f   : > { %s2249_s17 = scalar_select %p2044_p2, 1, 0 }
  0x90   : > { %s2053_s12 = scalar_lea.hbm %s2225_s0, %s1157_s10  ;;  %s294_s8 = scalar_lea.vmem [#allocation2], %s1141_s19 }
  0x91   : > { %s304_s9 = sshll.u32 %s294_s8, 4  ;;  %p2059_p4 = pnand %p1472_p0, %p2022_p7  ;;  %s2055_s9 = int_to_ptr.vmem [resolvable:$true] %s304_s9 }
  0x92   : > { %s2063_s20 = scalar_lea.sflag [#allocation3], %s290_s18  ;;  %s1678_s27 = scalar_lea.hbm %s2053_s12, 512 }
  0x93   : > { %p1679_p8 = scmp.ne.s32.totalorder %s2053_s12, %s1678_s27  ;;  %p1680_p1 = pneg %p2059_p4 }
  0x94   : > { %s1683_s6 = scalar_lea.hbm %s2225_s0, 1024  ;;  %p1684_p7 = scmp.lt.u32.totalorder %s2053_s12, %s2225_s0 }
  0x95   : > { %p1681_p3 = pnand %p1680_p1, %p1679_p8  ;;  %p1685_p9 = scmp.lt.u32.totalorder %s1683_s6, %s1678_s27 }
  0x96   : > { %p1687_p11 = scmp.lt.u32.totalorder %s1678_s27, %s2053_s12 }
  0x97   : > { %p1682_p5 = pneg %p1681_p3  ;;  %p1686_p10 = por %p1685_p9, %p1684_p7 }
  0x99   : > { %p1688_p12 = por %p1687_p11, %p1686_p10 }
  0x9b   : > { %p1689_p0 = pnand %p1688_p12, %p1682_p5 }
  0x9d   : > { %1692 = shalt.err (!%p1689_p0)
}
  0x9e   : > { %s1693_s18 = scalar_lea.vmem %s2055_s9, 512  ;;  %s1813_s19 = smov [#allocation2]  }
  0x9f   : > { %p1694_p8 = scmp.ne.s32.totalorder %s2055_s9, %s1693_s18  ;;  %s1698_s10 = sshll.u32 %s1813_s19, 4  ;;  %s1699_s10 = int_to_ptr.vmem [resolvable:$false] %s1698_s10 }
  0xa0   : > { %s1700_s13 = scalar_lea.vmem %s1699_s10, 1024  ;;  %p1701_p13 = scmp.lt.s32.totalorder %s2055_s9, %s1699_s10 }
  0xa1   : > { %p1696_p3 = pnand %p1694_p8, %p1680_p1  ;;  %p1702_p7 = scmp.lt.s32.totalorder %s1700_s13, %s1693_s18 }
  0xa3   : > { %p1697_p2 = pneg %p1696_p3  ;;  %p1703_p9 = por %p1702_p7, %p1701_p13 }
  0xa5   : > { %p1704_p10 = pnand %p1703_p9, %p1697_p2 }
  0xa7   : > { %1707 = shalt.err (!%p1704_p10)
}
  0xa8   : > { %s2251_s27 = smov 256   ;;  %p2252_p1 = scmp.ne.s32.totalorder %s2241_s29, 0 }
  0xa9   : > { %1462 = dma.hbm_to_vmem [thread:$0]  (!%p2059_p4), %s2053_s12, 512, %s2055_s9, %s2063_s20, %s2251_s27, %s2251_s27, %s1810_s30  }
  0xaa   : > { %316 = sbr.rel (%p2252_p1) target bundleno = 830 (0x33e), region = 44  ;;  %s2097_s6 = sand.u32 (!%p2252_p1), 1, %s1786_s22  }
  0xab   : > { %s1145_s8 = sshll.u32 (!%p2252_p1), %s2097_s6, 5  ;;  %s319_s18 = scalar_lea.sflag (!%p2252_p1), [#allocation3], %s2097_s6 }
  0xac   : > { %s2103_s7 = scalar_lea.vmem (!%p2252_p1), [#allocation2], %s1145_s8 }
  0xb1   : > { %1761 = dma.done.wait (%p2028_p6), %s319_s18, 512  }
  0xb2   : > { %1763 = vsyncadd (%p2028_p6), %s319_s18, 4294966784  ;;  %p2253_p13 = scmp.ne.s32.totalorder %s2240_s28, 0 }
  0xb4   : > { %1765 = dma.done.wait (%p2253_p13), [#allocation6], 9216  }
  0xb5   : > { %1767 = vsyncadd (%p2253_p13), [#allocation6], 4294958080 }
  0xb6   : > { %1769 = dma.done.wait (%p2253_p13), [#allocation9], 16384  }
  0xb7   : > { %1771 = vsyncadd (%p2253_p13), [#allocation9], 4294950912 }
  0xb8   : > { %1773 = dma.done.wait (%p2253_p13), [#allocation12], 8192  }
  0xb9   : > { %1775 = vsyncadd (%p2253_p13), [#allocation12], 4294959104  ;;  %v387_v0 = vld [vmem:[#allocation7 + $0x8] sm:$0xff]  ;;  %v389_v1 = vld [vmem:[#allocation7 + $0x18] sm:$0xff]  ;;  %s370_s28 = scalar_lea.vmem [#allocation13], %s1145_s8  ;;  %s1158_s20 = sshll.u32 %s1794_s24, 9 }
  0xba   : > { %v386_v2 = vld [vmem:[#allocation7] sm:$0xff]  ;;  %v1159_v3 = vpack.c.bf16 %v389_v1, %v387_v0  ;;  %v388_v4 = vld [vmem:[#allocation7 + $0x10] sm:$0xff]  ;;  %v391_v5 = vld [vmem:[#allocation7 + $0x28] sm:$0xff]  ;;  %s995_s29 = sshll.u32 %s370_s28, 4  ;;  %s2254_s12 = sld [smem:[#allocation19_spill]]  ;;  %s2171_s29 = int_to_ptr.vmem [resolvable:$true] %s995_s29 }
  0xbb   : > { %v393_v6 = vld [vmem:[#allocation7 + $0x38] sm:$0xff]  ;;  %v1161_v7 = vpack.c.bf16 %v388_v4, %v386_v2  ;;  %v390_v9 = vld [vmem:[#allocation7 + $0x20] sm:$0xff]  ;;  %v392_v10 = vld [vmem:[#allocation7 + $0x30] sm:$0xff]  ;;  %s979_s19 = scalar_lea.sflag [#allocation4], %s2097_s6  ;;  %s1708_s10 = scalar_lea.vmem %s2171_s29, 512 }
  0xbc   : > { %v1163_v8 = vpack.c.bf16 %v393_v6, %v391_v5  ;;  %v395_v11 = vld [vmem:[#allocation7 + $0x48] sm:$0xff]  ;;  %1160 = vmatprep.subr.bf16.mxu1 %v1159_v3  ;;  %v397_v12 = vld [vmem:[#allocation7 + $0x58] sm:$0xff]  ;;  %v1165_v13 = vpack.c.bf16 %v392_v10, %v390_v9  ;;  %v394_v15 = vld [vmem:[#allocation7 + $0x40] sm:$0xff]  ;;  %p1709_p6 = scmp.ne.s32.totalorder %s2171_s29, %s1708_s10  ;;  %p2255_p2 = scmp.ne.s32.totalorder %s2248_s14, 0 }
  0xbd   : > { %1162 = vmatpush1.bf16.msra.mxu1 %v1161_v7  ;;  %v1167_v14 = vpack.c.bf16 %v397_v12, %v395_v11  ;;  %v396_v16 = vld [vmem:[#allocation7 + $0x50] sm:$0xff]  ;;  %v399_v17 = vld [vmem:[#allocation7 + $0x68] sm:$0xff]  ;;  %v401_v18 = vld [vmem:[#allocation7 + $0x78] sm:$0xff]  ;;  %s1814_s24 = smov [#allocation13]  }
  0xbe   : > { %1164 = vmatprep.subr.bf16.mxu1 %v1163_v8  ;;  %v1169_v19 = vpack.c.bf16 %v396_v16, %v394_v15  ;;  %v1171_v20 = vpack.c.bf16 %v401_v18, %v399_v17  ;;  %v398_v21 = vld [vmem:[#allocation7 + $0x60] sm:$0xff]  ;;  %v400_v22 = vld [vmem:[#allocation7 + $0x70] sm:$0xff]  ;;  %v403_v23 = vld [vmem:[#allocation7 + $0x88] sm:$0xff]  ;;  %p1710_p4 = pnand %p1709_p6, %p2255_p2  ;;  %s1712_s13 = sshll.u32 %s1814_s24, 4  ;;  %s1713_s13 = int_to_ptr.vmem [resolvable:$false] %s1712_s13 }
  0xbf   : > { %v405_v24 = vld [vmem:[#allocation7 + $0x98] sm:$0xff]  ;;  %v1173_v25 = vpack.c.bf16 %v400_v22, %v398_v21  ;;  %v402_v27 = vld [vmem:[#allocation7 + $0x80] sm:$0xff]  ;;  %v404_v28 = vld [vmem:[#allocation7 + $0x90] sm:$0xff]  ;;  %s1714_s27 = scalar_lea.vmem %s1713_s13, 1024  ;;  %p1715_p11 = scmp.lt.s32.totalorder %s2171_s29, %s1713_s13 }
  0xc0   : > { %v1175_v26 = vpack.c.bf16 %v405_v24, %v403_v23  ;;  %v407_v29 = vld [vmem:[#allocation7 + $0xa8] sm:$0xff]  ;;  %v409_v30 = vld [vmem:[#allocation7 + $0xb8] sm:$0xff]  ;;  %v1177_v31 = vpack.c.bf16 %v404_v28, %v402_v27  ;;  %v406_v33 = vld [vmem:[#allocation7 + $0xa0] sm:$0xff]  ;;  %s2176_s9 = scalar_lea.hbm %s2254_s12, %s1158_s20  ;;  %p1711_p5 = pneg %p1710_p4 }
  0xc1   : > { %1166 = vmatpush1.bf16.msra.mxu1 %v1165_v13  ;;  %v1179_v32 = vpack.c.bf16 %v409_v30, %v407_v29  ;;  %v408_v34 = vld [vmem:[#allocation7 + $0xb0] sm:$0xff]  ;;  %v411_v35 = vld [vmem:[#allocation7 + $0xc8] sm:$0xff]  ;;  %v413_v36 = vld [vmem:[#allocation7 + $0xd8] sm:$0xff]  ;;  %p1716_p12 = scmp.lt.s32.totalorder %s1714_s27, %s1708_s10 }
  0xc2   : > { %1168 = vmatprep.subr.bf16.mxu1 %v1167_v14  ;;  %v1181_v37 = vpack.c.bf16 %v408_v34, %v406_v33  ;;  %v1183_v38 = vpack.c.bf16 %v413_v36, %v411_v35  ;;  %v410_v39 = vld [vmem:[#allocation7 + $0xc0] sm:$0xff]  ;;  %v412_v40 = vld [vmem:[#allocation7 + $0xd0] sm:$0xff]  ;;  %v2122_v41 = vld [vmem:[%s2103_s7 + $0x8] sm:$0xff] }
  0xc3   : > { %v415_v42 = vld [vmem:[#allocation7 + $0xe8] sm:$0xff]  ;;  %v417_v43 = vld [vmem:[#allocation7 + $0xf8] sm:$0xff]  ;;  %514 = vmatprep.mubr.f32.mxu1 %v2122_v41  ;;  %v1185_v44 = vpack.c.bf16 %v412_v40, %v410_v39  ;;  %v414_v46 = vld [vmem:[#allocation7 + $0xe0] sm:$0xff]  ;;  %p1717_p0 = por %p1716_p12, %p1715_p11 }
  0xc4   : > { %v1187_v45 = vpack.c.bf16 %v417_v43, %v415_v42  ;;  %v416_v47 = vld [vmem:[#allocation7 + $0xf0] sm:$0xff]  ;;  %v419_v48 = vld [vmem:[#allocation7 + $0x108] sm:$0xff]  ;;  %v421_v49 = vld [vmem:[#allocation7 + $0x118] sm:$0xff] }
  0xc5   : > { %1170 = vmatpush1.bf16.msra.mxu1 %v1169_v19  ;;  %v1189_v50 = vpack.c.bf16 %v416_v47, %v414_v46  ;;  %v1191_v51 = vpack.c.bf16 %v421_v49, %v419_v48  ;;  %v418_v52 = vld [vmem:[#allocation7 + $0x100] sm:$0xff]  ;;  %v420_v53 = vld [vmem:[#allocation7 + $0x110] sm:$0xff]  ;;  %v423_v54 = vld [vmem:[#allocation7 + $0x128] sm:$0xff]  ;;  %p1718_p8 = pnand %p1717_p0, %p1711_p5 }
  0xc6   : > { %1172 = vmatprep.subr.bf16.mxu1 %v1171_v20  ;;  %v425_v55 = vld [vmem:[#allocation7 + $0x138] sm:$0xff]  ;;  %v1193_v56 = vpack.c.bf16 %v420_v53, %v418_v52  ;;  %v422_v58 = vld [vmem:[#allocation7 + $0x120] sm:$0xff]  ;;  %v424_v59 = vld [vmem:[#allocation7 + $0x130] sm:$0xff] }
  0xc7   : > { %v1195_v57 = vpack.c.bf16 %v425_v55, %v423_v54  ;;  %v427_v60 = vld [vmem:[#allocation7 + $0x148] sm:$0xff]  ;;  %v429_v61 = vld [vmem:[#allocation7 + $0x158] sm:$0xff]  ;;  %v1197_v62 = vpack.c.bf16 %v424_v59, %v422_v58  ;;  %v426_v0 = vld [vmem:[#allocation7 + $0x140] sm:$0xff] }
  0xc8   : > { %v1199_v63 = vpack.c.bf16 %v429_v61, %v427_v60  ;;  %v428_v1 = vld [vmem:[#allocation7 + $0x150] sm:$0xff]  ;;  %v431_v2 = vld [vmem:[#allocation7 + $0x168] sm:$0xff]  ;;  %v433_v3 = vld [vmem:[#allocation7 + $0x178] sm:$0xff] }
  0xc9   : > { %1174 = vmatpush1.bf16.msra.mxu1 %v1173_v25  ;;  %v1201_v4 = vpack.c.bf16 %v428_v1, %v426_v0  ;;  %v1203_v5 = vpack.c.bf16 %v433_v3, %v431_v2  ;;  %v430_v6 = vld [vmem:[#allocation7 + $0x160] sm:$0xff]  ;;  %v432_v7 = vld [vmem:[#allocation7 + $0x170] sm:$0xff]  ;;  %v435_v8 = vld [vmem:[#allocation7 + $0x188] sm:$0xff] }
  0xca   : > { %1176 = vmatprep.subr.bf16.mxu1 %v1175_v26  ;;  %v437_v9 = vld [vmem:[#allocation7 + $0x198] sm:$0xff]  ;;  %v1205_v10 = vpack.c.bf16 %v432_v7, %v430_v6  ;;  %v434_v12 = vld [vmem:[#allocation7 + $0x180] sm:$0xff]  ;;  %v436_v13 = vld [vmem:[#allocation7 + $0x190] sm:$0xff] }
  0xcb   : > { %v1207_v11 = vpack.c.bf16 %v437_v9, %v435_v8  ;;  %v439_v14 = vld [vmem:[#allocation7 + $0x1a8] sm:$0xff]  ;;  %v441_v15 = vld [vmem:[#allocation7 + $0x1b8] sm:$0xff]  ;;  %v1209_v16 = vpack.c.bf16 %v436_v13, %v434_v12  ;;  %v438_v18 = vld [vmem:[#allocation7 + $0x1a0] sm:$0xff] }
  0xcc   : > { %v1211_v17 = vpack.c.bf16 %v441_v15, %v439_v14  ;;  %v440_v19 = vld [vmem:[#allocation7 + $0x1b0] sm:$0xff]  ;;  %v443_v20 = vld [vmem:[#allocation7 + $0x1c8] sm:$0xff]  ;;  %v445_v21 = vld [vmem:[#allocation7 + $0x1d8] sm:$0xff] }
  0xcd   : > { %1178 = vmatpush1.bf16.msra.mxu1 %v1177_v31  ;;  %v1213_v22 = vpack.c.bf16 %v440_v19, %v438_v18  ;;  %v1215_v23 = vpack.c.bf16 %v445_v21, %v443_v20  ;;  %v442_v24 = vld [vmem:[#allocation7 + $0x1c0] sm:$0xff]  ;;  %v444_v25 = vld [vmem:[#allocation7 + $0x1d0] sm:$0xff]  ;;  %v447_v26 = vld [vmem:[#allocation7 + $0x1e8] sm:$0xff] }
  0xce   : > { %1180 = vmatprep.subr.bf16.mxu1 %v1179_v32  ;;  %v449_v27 = vld [vmem:[#allocation7 + $0x1f8] sm:$0xff]  ;;  %v1217_v28 = vpack.c.bf16 %v444_v25, %v442_v24  ;;  %v446_v30 = vld [vmem:[#allocation7 + $0x1e0] sm:$0xff]  ;;  %v448_v31 = vld [vmem:[#allocation7 + $0x1f0] sm:$0xff] }
  0xcf   : > { %v1219_v29 = vpack.c.bf16 %v449_v27, %v447_v26  ;;  %v528_v32 = vld [vmem:[#allocation8 + $0x8] sm:$0xff]  ;;  %v530_v33 = vld [vmem:[#allocation8 + $0x18] sm:$0xff]  ;;  %v1221_v34 = vpack.c.bf16 %v448_v31, %v446_v30  ;;  %v527_v36 = vld [vmem:[#allocation8] sm:$0xff] }
  0xd0   : > { %v1223_v35 = vpack.c.bf16 %v530_v33, %v528_v32  ;;  %v534_v39 = vld [vmem:[#allocation8 + $0x38] sm:$0xff]  ;;  %v2126_v40 = vld [vmem:[%s2103_s7] sm:$0xff]  ;;  %v536_v47 = vld [vmem:[#allocation8 + $0x48] sm:$0xff] }
  0xd1   : > { %1182 = vmatpush1.bf16.msra.mxu1 %v1181_v37  ;;  %v529_v37 = vld [vmem:[#allocation8 + $0x10] sm:$0xff]  ;;  %v2129_v46 = vld [vmem:[%s2103_s7 + $0x18] sm:$0xff]  ;;  %v535_v52 = vld [vmem:[#allocation8 + $0x40] sm:$0xff] }
  0xd2   : > { %1184 = vmatprep.subr.bf16.mxu1 %v1183_v38  ;;  %v532_v38 = vld [vmem:[#allocation8 + $0x28] sm:$0xff]  ;;  %v1225_v42 = vpack.c.bf16 %v529_v37, %v527_v36  ;;  %v538_v48 = vld [vmem:[#allocation8 + $0x58] sm:$0xff]  ;;  %v537_v53 = vld [vmem:[#allocation8 + $0x50] sm:$0xff] }
  0xd3   : > { %v1227_v43 = vpack.c.bf16 %v534_v39, %v532_v38  ;;  %v540_v54 = vld [vmem:[#allocation8 + $0x68] sm:$0xff]  ;;  %v542_v55 = vld [vmem:[#allocation8 + $0x78] sm:$0xff]  ;;  %v539_v58 = vld [vmem:[#allocation8 + $0x60] sm:$0xff] }
  0xd4   : > { %v541_v59 = vld [vmem:[#allocation8 + $0x70] sm:$0xff]  ;;  %v544_v60 = vld [vmem:[#allocation8 + $0x88] sm:$0xff]  ;;  %v546_v61 = vld [vmem:[#allocation8 + $0x98] sm:$0xff] }
  0xd5   : > { %1186 = vmatpush1.bf16.msra.mxu1 %v1185_v44  ;;  %v531_v44 = vld [vmem:[#allocation8 + $0x20] sm:$0xff]  ;;  %v545_v1 = vld [vmem:[#allocation8 + $0x90] sm:$0xff]  ;;  %v548_v2 = vld [vmem:[#allocation8 + $0xa8] sm:$0xff] }
  0xd6   : > { %1188 = vmatprep.subr.bf16.mxu1 %v1187_v45  ;;  %v533_v45 = vld [vmem:[#allocation8 + $0x30] sm:$0xff]  ;;  %v543_v0 = vld [vmem:[#allocation8 + $0x80] sm:$0xff]  ;;  %v550_v3 = vld [vmem:[#allocation8 + $0xb8] sm:$0xff] }
  0xd7   : > { %v1229_v49 = vpack.c.bf16 %v533_v45, %v531_v44  ;;  %v547_v6 = vld [vmem:[#allocation8 + $0xa0] sm:$0xff]  ;;  %v552_v7 = vld [vmem:[#allocation8 + $0xc8] sm:$0xff]  ;;  %v554_v8 = vld [vmem:[#allocation8 + $0xd8] sm:$0xff] }
  0xd8   : > { %v553_v12 = vld [vmem:[#allocation8 + $0xd0] sm:$0xff]  ;;  %v556_v13 = vld [vmem:[#allocation8 + $0xe8] sm:$0xff]  ;;  %v558_v14 = vld [vmem:[#allocation8 + $0xf8] sm:$0xff] }
  0xd9   : > { %1190 = vmatpush1.bf16.msra.mxu1 %v1189_v50  ;;  %v2134_v50 = vld [vmem:[%s2103_s7 + $0x10] sm:$0xff]  ;;  %v560_v19 = vld [vmem:[#allocation8 + $0x108] sm:$0xff]  ;;  %v562_v20 = vld [vmem:[#allocation8 + $0x118] sm:$0xff] }
  0xda   : > { %1192 = vmatprep.subr.bf16.mxu1 %v1191_v51  ;;  %v1231_v51 = vpack.c.bf16 %v538_v48, %v536_v47  ;;  %v557_v18 = vld [vmem:[#allocation8 + $0xf0] sm:$0xff]  ;;  %v564_v25 = vld [vmem:[#allocation8 + $0x128] sm:$0xff]  ;;  %v566_v26 = vld [vmem:[#allocation8 + $0x138] sm:$0xff] }
  0xdb   : > { %v561_v24 = vld [vmem:[#allocation8 + $0x110] sm:$0xff]  ;;  %v568_v31 = vld [vmem:[#allocation8 + $0x148] sm:$0xff]  ;;  %v570_v32 = vld [vmem:[#allocation8 + $0x158] sm:$0xff] }
  0xdc   : > { %v565_v30 = vld [vmem:[#allocation8 + $0x130] sm:$0xff]  ;;  %v572_v37 = vld [vmem:[#allocation8 + $0x168] sm:$0xff]  ;;  %v574_v38 = vld [vmem:[#allocation8 + $0x178] sm:$0xff] }
  0xdd   : > { %1194 = vmatpush1.bf16.msra.mxu1 %v1193_v56  ;;  %v1233_v56 = vpack.c.bf16 %v537_v53, %v535_v52  ;;  %v569_v36 = vld [vmem:[#allocation8 + $0x150] sm:$0xff]  ;;  %v576_v45 = vld [vmem:[#allocation8 + $0x188] sm:$0xff]  ;;  %v578_v47 = vld [vmem:[#allocation8 + $0x198] sm:$0xff] }
  0xde   : > { %1196 = vmatprep.subr.bf16.mxu1 %v1195_v57  ;;  %v1235_v57 = vpack.c.bf16 %v542_v55, %v540_v54  ;;  %v573_v44 = vld [vmem:[#allocation8 + $0x170] sm:$0xff]  ;;  %v580_v53 = vld [vmem:[#allocation8 + $0x1a8] sm:$0xff]  ;;  %v582_v54 = vld [vmem:[#allocation8 + $0x1b8] sm:$0xff] }
  0xdf   : > { %v577_v52 = vld [vmem:[#allocation8 + $0x190] sm:$0xff] }
  0xe1   : > { %1198 = vmatpush1.bf16.msra.mxu1 %v1197_v62  ;;  %v1237_v62 = vpack.c.bf16 %v541_v59, %v539_v58  ;;  %v581_v58 = vld [vmem:[#allocation8 + $0x1b0] sm:$0xff]  ;;  %v584_v59 = vld [vmem:[#allocation8 + $0x1c8] sm:$0xff] }
  0xe2   : > { %1200 = vmatprep.subr.bf16.mxu1 %v1199_v63  ;;  %v1239_v63 = vpack.c.bf16 %v546_v61, %v544_v60  ;;  %v586_v60 = vld [vmem:[#allocation8 + $0x1d8] sm:$0xff] }
  0xe5   : > { %1202 = vmatpush1.bf16.msra.mxu1 %v1201_v4  ;;  %v1241_v4 = vpack.c.bf16 %v545_v1, %v543_v0  ;;  %v585_v0 = vld [vmem:[#allocation8 + $0x1d0] sm:$0xff]  ;;  %v588_v1 = vld [vmem:[#allocation8 + $0x1e8] sm:$0xff] }
  0xe6   : > { %1204 = vmatprep.subr.bf16.mxu1 %v1203_v5  ;;  %v1243_v5 = vpack.c.bf16 %v550_v3, %v548_v2  ;;  %v590_v2 = vld [vmem:[#allocation8 + $0x1f8] sm:$0xff] }
  0xe9   : > { %1206 = vmatpush1.bf16.msra.mxu1 %v1205_v10  ;;  %v1247_v10 = vpack.c.bf16 %v554_v8, %v552_v7  ;;  %v757_v7 = vld [vmem:[#allocation11 + $0x8] sm:$0xff]  ;;  %v759_v8 = vld [vmem:[#allocation11 + $0x18] sm:$0xff] }
  0xea   : > { %1208 = vmatprep.subr.bf16.mxu1 %v1207_v11  ;;  %v551_v11 = vld [vmem:[#allocation8 + $0xc0] sm:$0xff] }
  0xeb   : > { %v1249_v15 = vpack.c.bf16 %v553_v12, %v551_v11  ;;  %v758_v11 = vld [vmem:[#allocation11 + $0x10] sm:$0xff]  ;;  %v761_v12 = vld [vmem:[#allocation11 + $0x28] sm:$0xff] }
  0xed   : > { %1210 = vmatpush1.bf16.msra.mxu1 %v1209_v16  ;;  %v1251_v16 = vpack.c.bf16 %v558_v14, %v556_v13  ;;  %v763_v13 = vld [vmem:[#allocation11 + $0x38] sm:$0xff] }
  0xee   : > { %1212 = vmatprep.subr.bf16.mxu1 %v1211_v17  ;;  %v555_v17 = vld [vmem:[#allocation8 + $0xe0] sm:$0xff] }
  0xef   : > { %v1253_v21 = vpack.c.bf16 %v557_v18, %v555_v17  ;;  %v762_v17 = vld [vmem:[#allocation11 + $0x30] sm:$0xff]  ;;  %v765_v18 = vld [vmem:[#allocation11 + $0x48] sm:$0xff] }
  0xf1   : > { %1214 = vmatpush1.bf16.msra.mxu1 %v1213_v22  ;;  %v1255_v22 = vpack.c.bf16 %v562_v20, %v560_v19  ;;  %v767_v19 = vld [vmem:[#allocation11 + $0x58] sm:$0xff]  ;;  %v764_v20 = vld [vmem:[#allocation11 + $0x40] sm:$0xff] }
  0xf2   : > { %1216 = vmatprep.subr.bf16.mxu1 %v1215_v23  ;;  %v559_v23 = vld [vmem:[#allocation8 + $0x100] sm:$0xff] }
  0xf3   : > { %v1257_v27 = vpack.c.bf16 %v561_v24, %v559_v23 }
  0xf5   : > { %1218 = vmatpush1.bf16.msra.mxu1 %v1217_v28  ;;  %v1259_v28 = vpack.c.bf16 %v566_v26, %v564_v25  ;;  %v768_v25 = vld [vmem:[#allocation11 + $0x60] sm:$0xff]  ;;  %v770_v26 = vld [vmem:[#allocation11 + $0x70] sm:$0xff] }
  0xf6   : > { %1220 = vmatprep.subr.bf16.mxu1 %v1219_v29  ;;  %v563_v29 = vld [vmem:[#allocation8 + $0x120] sm:$0xff] }
  0xf7   : > { %v1261_v33 = vpack.c.bf16 %v565_v30, %v563_v29  ;;  %v1301_v29 = vpack.c.bf16 %v770_v26, %v768_v25 }
  0xf9   : > { %1222 = vmatpush1.bf16.msra.mxu1 %v1221_v34  ;;  %v1263_v34 = vpack.c.bf16 %v570_v32, %v568_v31  ;;  %v772_v31 = vld [vmem:[#allocation11 + $0x80] sm:$0xff]  ;;  %v774_v32 = vld [vmem:[#allocation11 + $0x90] sm:$0xff] }
  0xfa   : > { %1224 = vmatprep.subr.bf16.mxu1 %v1223_v35  ;;  %v567_v35 = vld [vmem:[#allocation8 + $0x140] sm:$0xff] }
  0xfb   : > { %v1265_v39 = vpack.c.bf16 %v569_v36, %v567_v35  ;;  %v1305_v35 = vpack.c.bf16 %v774_v32, %v772_v31  ;;  %v819_v31 = vld [vmem:[#allocation11 + $0x1f8] sm:$0xff] }
  0xfc   : > { %515 = vmatmul.mubr.f32.vlgmr.msra.gmra.mrb[0].mxu1 %v2126_v40 }
  0xfd   : > { %1226 = vmatpush1.bf16.msra.mxu1 %v1225_v42  ;;  %520 = vmatprep.mubr.f32.mxu1 %v2129_v46  ;;  %v1267_v42 = vpack.c.bf16 %v574_v38, %v572_v37  ;;  %v776_v37 = vld [vmem:[#allocation11 + $0xa0] sm:$0xff]  ;;  %v778_v38 = vld [vmem:[#allocation11 + $0xb0] sm:$0xff] }
  0xfe   : > { %1228 = vmatprep.subr.bf16.mxu1 %v1227_v43  ;;  %v571_v43 = vld [vmem:[#allocation8 + $0x160] sm:$0xff] }
  0xff   : > { %v1269_v48 = vpack.c.bf16 %v573_v44, %v571_v43  ;;  %v1309_v43 = vpack.c.bf16 %v778_v38, %v776_v37  ;;  %v695_v37 = vld [vmem:[#allocation10 + $0x18] sm:$0xff] }
 0x100   : > { %521 = vmatmul.mubr.f32.gmra.mrb[2].mxu1 %v2134_v50 }
 0x101   : > { %1230 = vmatpush1.bf16.msra.mxu1 %v1229_v49  ;;  %655 = vmatprep.mubr.f32.mxu1 %v2122_v41  ;;  %v549_v41 = vld [vmem:[#allocation8 + $0xb0] sm:$0xff]  ;;  %v1271_v49 = vpack.c.bf16 %v578_v47, %v576_v45  ;;  %v780_v45 = vld [vmem:[#allocation11 + $0xc0] sm:$0xff] }
 0x102   : > { %1232 = vmatprep.subr.bf16.mxu1 %v1231_v51  ;;  %v1245_v9 = vpack.c.bf16 %v549_v41, %v547_v6  ;;  %v575_v51 = vld [vmem:[#allocation8 + $0x180] sm:$0xff]  ;;  %v589_v6 = vld [vmem:[#allocation8 + $0x1f0] sm:$0xff] }
 0x103   : > { %v1273_v55 = vpack.c.bf16 %v577_v52, %v575_v51  ;;  %v782_v47 = vld [vmem:[#allocation11 + $0xd0] sm:$0xff] }
 0x104   : > { %v1313_v51 = vpack.c.bf16 %v782_v47, %v780_v45  ;;  %v382_v45 = vld [vmem:[#allocation5 + $0x20] sm:$0xff] }
 0x105   : > { %1234 = vmatpush1.bf16.msra.mxu1 %v1233_v56  ;;  %v1275_v56 = vpack.c.bf16 %v582_v54, %v580_v53  ;;  %v784_v53 = vld [vmem:[#allocation11 + $0xe0] sm:$0xff]  ;;  %v786_v54 = vld [vmem:[#allocation11 + $0xf0] sm:$0xff] }
 0x106   : > { %1236 = vmatprep.subr.bf16.mxu1 %v1235_v57  ;;  %v579_v57 = vld [vmem:[#allocation8 + $0x1a0] sm:$0xff] }
 0x107   : > { %v1277_v61 = vpack.c.bf16 %v581_v58, %v579_v57  ;;  %v1317_v57 = vpack.c.bf16 %v786_v54, %v784_v53  ;;  %v381_v53 = vld [vmem:[#allocation5 + $0x18] sm:$0xff] }
 0x109   : > { %1238 = vmatpush1.bf16.msra.mxu1 %v1237_v62  ;;  %v1279_v62 = vpack.c.bf16 %v586_v60, %v584_v59  ;;  %v788_v59 = vld [vmem:[#allocation11 + $0x100] sm:$0xff]  ;;  %v790_v60 = vld [vmem:[#allocation11 + $0x110] sm:$0xff] }
 0x10a   : > { %1240 = vmatprep.subr.bf16.mxu1 %v1239_v63  ;;  %v583_v63 = vld [vmem:[#allocation8 + $0x1c0] sm:$0xff] }
 0x10b   : > { %v1281_v3 = vpack.c.bf16 %v585_v0, %v583_v63  ;;  %v1321_v63 = vpack.c.bf16 %v790_v60, %v788_v59  ;;  %v692_v59 = vld [vmem:[#allocation10] sm:$0xff]  ;;  %v694_v60 = vld [vmem:[#allocation10 + $0x10] sm:$0xff] }
 0x10d   : > { %1242 = vmatpush1.bf16.msra.mxu1 %v1241_v4  ;;  %v1283_v4 = vpack.c.bf16 %v590_v2, %v588_v1  ;;  %v792_v1 = vld [vmem:[#allocation11 + $0x120] sm:$0xff]  ;;  %v794_v2 = vld [vmem:[#allocation11 + $0x130] sm:$0xff] }
 0x10e   : > { %1244 = vmatprep.subr.bf16.mxu1 %v1243_v5  ;;  %v587_v5 = vld [vmem:[#allocation8 + $0x1e0] sm:$0xff] }
 0x10f   : > { %v1285_v41 = vpack.c.bf16 %v589_v6, %v587_v5  ;;  %v1325_v5 = vpack.c.bf16 %v794_v2, %v792_v1  ;;  %v697_v2 = vld [vmem:[#allocation10 + $0x28] sm:$0xff] }
 0x111   : > { %1246 = vmatpush1.bf16.msra.mxu1 %v1245_v9  ;;  %v756_v9 = vld [vmem:[#allocation11] sm:$0xff] }
 0x112   : > { %1248 = vmatprep.subr.bf16.mxu1 %v1247_v10  ;;  %v1287_v10 = vpack.c.bf16 %v759_v8, %v757_v7  ;;  %v1289_v14 = vpack.c.bf16 %v758_v11, %v756_v9  ;;  %v798_v7 = vld [vmem:[#allocation11 + $0x150] sm:$0xff]  ;;  %v801_v8 = vld [vmem:[#allocation11 + $0x168] sm:$0xff]  ;;  %v803_v9 = vld [vmem:[#allocation11 + $0x178] sm:$0xff] }
 0x113   : > { %v1331_v11 = vpack.c.bf16 %v803_v9, %v801_v8 }
 0x114   : > { %1288 = vmatprep.subr.bf16.mxu0 %v1287_v10 }
 0x115   : > { %1250 = vmatpush1.bf16.msra.mxu1 %v1249_v15  ;;  %v1291_v15 = vpack.c.bf16 %v763_v13, %v761_v12  ;;  %1290 = vmatpush1.bf16.msra.mxu0 %v1289_v14  ;;  %v800_v12 = vld [vmem:[#allocation11 + $0x160] sm:$0xff]  ;;  %v802_v13 = vld [vmem:[#allocation11 + $0x170] sm:$0xff]  ;;  %v805_v14 = vld [vmem:[#allocation11 + $0x188] sm:$0xff] }
 0x116   : > { %1252 = vmatprep.subr.bf16.mxu1 %v1251_v16  ;;  %v760_v16 = vld [vmem:[#allocation11 + $0x20] sm:$0xff] }
 0x117   : > { %1292 = vmatprep.subr.bf16.mxu0 %v1291_v15  ;;  %v807_v15 = vld [vmem:[#allocation11 + $0x198] sm:$0xff] }
 0x119   : > { %1254 = vmatpush1.bf16.msra.mxu1 %v1253_v21  ;;  %v769_v21 = vld [vmem:[#allocation11 + $0x68] sm:$0xff] }
 0x11a   : > { %1256 = vmatprep.subr.bf16.mxu1 %v1255_v22  ;;  %v771_v22 = vld [vmem:[#allocation11 + $0x78] sm:$0xff] }
 0x11b   : > { %v1299_v24 = vpack.c.bf16 %v771_v22, %v769_v21  ;;  %v808_v21 = vld [vmem:[#allocation11 + $0x1a0] sm:$0xff]  ;;  %v810_v22 = vld [vmem:[#allocation11 + $0x1b0] sm:$0xff] }
 0x11c   : > { %v1341_v25 = vpack.c.bf16 %v810_v22, %v808_v21 }
 0x11d   : > { %1258 = vmatpush1.bf16.msra.mxu1 %v1257_v27  ;;  %v773_v27 = vld [vmem:[#allocation11 + $0x88] sm:$0xff] }
 0x11e   : > { %1260 = vmatprep.subr.bf16.mxu1 %v1259_v28  ;;  %v775_v28 = vld [vmem:[#allocation11 + $0x98] sm:$0xff] }
 0x11f   : > { %v1303_v30 = vpack.c.bf16 %v775_v28, %v773_v27  ;;  %v812_v27 = vld [vmem:[#allocation11 + $0x1c0] sm:$0xff]  ;;  %v814_v28 = vld [vmem:[#allocation11 + $0x1d0] sm:$0xff] }
 0x121   : > { %1262 = vmatpush1.bf16.msra.mxu1 %v1261_v33  ;;  %v777_v33 = vld [vmem:[#allocation11 + $0xa8] sm:$0xff] }
 0x122   : > { %1264 = vmatprep.subr.bf16.mxu1 %v1263_v34  ;;  %v779_v34 = vld [vmem:[#allocation11 + $0xb8] sm:$0xff] }
 0x123   : > { %v1307_v36 = vpack.c.bf16 %v779_v34, %v777_v33  ;;  %v816_v33 = vld [vmem:[#allocation11 + $0x1e0] sm:$0xff]  ;;  %v818_v34 = vld [vmem:[#allocation11 + $0x1f0] sm:$0xff] }
 0x125   : > { %1266 = vmatpush1.bf16.msra.mxu1 %v1265_v39  ;;  %v781_v39 = vld [vmem:[#allocation11 + $0xc8] sm:$0xff] }
 0x126   : > { %1268 = vmatprep.subr.bf16.mxu1 %v1267_v42  ;;  %v783_v42 = vld [vmem:[#allocation11 + $0xd8] sm:$0xff] }
 0x127   : > { %v1311_v44 = vpack.c.bf16 %v783_v42, %v781_v39  ;;  %v378_v39 = vld [vmem:[#allocation5] sm:$0xff] }
 0x129   : > { %1270 = vmatpush1.bf16.msra.mxu1 %v1269_v48  ;;  %v785_v48 = vld [vmem:[#allocation11 + $0xe8] sm:$0xff] }
 0x12a   : > { %1272 = vmatprep.subr.bf16.mxu1 %v1271_v49  ;;  %v787_v49 = vld [vmem:[#allocation11 + $0xf8] sm:$0xff] }
 0x12b   : > { %v1315_v52 = vpack.c.bf16 %v787_v49, %v785_v48 }
 0x12d   : > { %1274 = vmatpush1.bf16.msra.mxu1 %v1273_v55  ;;  %v789_v55 = vld [vmem:[#allocation11 + $0x108] sm:$0xff] }
 0x12e   : > { %1276 = vmatprep.subr.bf16.mxu1 %v1275_v56  ;;  %v791_v56 = vld [vmem:[#allocation11 + $0x118] sm:$0xff] }
 0x12f   : > { %v1319_v58 = vpack.c.bf16 %v791_v56, %v789_v55 }
 0x131   : > { %1278 = vmatpush1.bf16.msra.mxu1 %v1277_v61  ;;  %v793_v61 = vld [vmem:[#allocation11 + $0x128] sm:$0xff] }
 0x132   : > { %1280 = vmatprep.subr.bf16.mxu1 %v1279_v62  ;;  %v795_v62 = vld [vmem:[#allocation11 + $0x138] sm:$0xff] }
 0x133   : > { %v1323_v0 = vpack.c.bf16 %v795_v62, %v793_v61 }
 0x135   : > { %1282 = vmatpush1.bf16.msra.mxu1 %v1281_v3  ;;  %v797_v3 = vld [vmem:[#allocation11 + $0x148] sm:$0xff] }
 0x136   : > { %1284 = vmatprep.subr.bf16.mxu1 %v1283_v4  ;;  %v799_v4 = vld [vmem:[#allocation11 + $0x158] sm:$0xff] }
 0x137   : > { %v1327_v6 = vpack.c.bf16 %v799_v4, %v797_v3  ;;  %v699_v3 = vld [vmem:[#allocation10 + $0x38] sm:$0xff] }
 0x139   : > { %1286 = vmatpush1.bf16.msra.mxu1 %v1285_v41  ;;  %v796_v41 = vld [vmem:[#allocation11 + $0x140] sm:$0xff] }
 0x13a   : > { %v1329_v10 = vpack.c.bf16 %v798_v7, %v796_v41  ;;  %v385_v41 = vld [vmem:[#allocation5 + $0x38] sm:$0xff] }
 0x13c   : > { %656 = vmatmul.mubr.f32.vlgmr.msra.gmra.mrb[4].mxu1 %v2126_v40  ;;  %v1293_v40 = vpack.c.bf16 %v762_v17, %v760_v16  ;;  %v1333_v16 = vpack.c.bf16 %v802_v13, %v800_v12  ;;  %v1335_v17 = vpack.c.bf16 %v807_v15, %v805_v14  ;;  %v1355_v15 = vpack.c.bf16 %v699_v3, %v697_v2  ;;  %v725_v2 = vld [vmem:[#allocation10 + $0x108] sm:$0xff]  ;;  %v727_v3 = vld [vmem:[#allocation10 + $0x118] sm:$0xff] }
 0x13d   : > { %661 = vmatprep.mubr.f32.mxu1 %v2129_v46  ;;  %v1295_v46 = vpack.c.bf16 %v767_v19, %v765_v18  ;;  %v804_v18 = vld [vmem:[#allocation11 + $0x180] sm:$0xff]  ;;  %v806_v19 = vld [vmem:[#allocation11 + $0x190] sm:$0xff] }
 0x13e   : > { %1294 = vmatpush1.bf16.msra.mxu0 %v1293_v40  ;;  %v809_v40 = vld [vmem:[#allocation11 + $0x1a8] sm:$0xff] }
 0x13f   : > { %1296 = vmatprep.subr.bf16.mxu0 %v1295_v46  ;;  %v811_v46 = vld [vmem:[#allocation11 + $0x1b8] sm:$0xff] }
 0x140   : > { %662 = vmatmul.mubr.f32.gmra.mrb[6].mxu1 %v2134_v50  ;;  %v766_v50 = vld [vmem:[#allocation11 + $0x50] sm:$0xff] }
 0x141   : > { %v1297_v23 = vpack.c.bf16 %v766_v50, %v764_v20  ;;  %v1337_v20 = vpack.c.bf16 %v806_v19, %v804_v18  ;;  %v1339_v50 = vpack.c.bf16 %v811_v46, %v809_v40 }
 0x143   : > { %1298 = vmatpush1.bf16.msra.mxu0 %v1297_v23  ;;  %v813_v23 = vld [vmem:[#allocation11 + $0x1c8] sm:$0xff] }
 0x144   : > { %1300 = vmatprep.subr.bf16.mxu0 %v1299_v24  ;;  %v815_v24 = vld [vmem:[#allocation11 + $0x1d8] sm:$0xff] }
 0x145   : > { %v1343_v26 = vpack.c.bf16 %v815_v24, %v813_v23 }
 0x147   : > { %1302 = vmatpush1.bf16.msra.mxu0 %v1301_v29  ;;  %v1345_v29 = vpack.c.bf16 %v814_v28, %v812_v27  ;;  %v700_v27 = vld [vmem:[#allocation10 + $0x40] sm:$0xff]  ;;  %v702_v28 = vld [vmem:[#allocation10 + $0x50] sm:$0xff] }
 0x148   : > { %1304 = vmatprep.subr.bf16.mxu0 %v1303_v30  ;;  %v817_v30 = vld [vmem:[#allocation11 + $0x1e8] sm:$0xff] }
 0x149   : > { %v1347_v32 = vpack.c.bf16 %v819_v31, %v817_v30  ;;  %v707_v30 = vld [vmem:[#allocation10 + $0x78] sm:$0xff]  ;;  %v1361_v31 = vpack.c.bf16 %v702_v28, %v700_v27  ;;  %v738_v27 = vld [vmem:[#allocation10 + $0x170] sm:$0xff]  ;;  %v741_v28 = vld [vmem:[#allocation10 + $0x188] sm:$0xff] }
 0x14b   : > { %1306 = vmatpush1.bf16.msra.mxu0 %v1305_v35  ;;  %v1349_v35 = vpack.c.bf16 %v818_v34, %v816_v33  ;;  %v704_v33 = vld [vmem:[#allocation10 + $0x60] sm:$0xff]  ;;  %v706_v34 = vld [vmem:[#allocation10 + $0x70] sm:$0xff] }
 0x14c   : > { %1308 = vmatprep.subr.bf16.mxu0 %v1307_v36  ;;  %v693_v36 = vld [vmem:[#allocation10 + $0x8] sm:$0xff] }
 0x14d   : > { %v1351_v38 = vpack.c.bf16 %v695_v37, %v693_v36  ;;  %v711_v36 = vld [vmem:[#allocation10 + $0x98] sm:$0xff]  ;;  %v1365_v37 = vpack.c.bf16 %v706_v34, %v704_v33  ;;  %v742_v33 = vld [vmem:[#allocation10 + $0x190] sm:$0xff]  ;;  %v745_v34 = vld [vmem:[#allocation10 + $0x1a8] sm:$0xff] }
 0x14f   : > { %1310 = vmatpush1.bf16.msra.mxu0 %v1309_v43 }
 0x150   : > { %1312 = vmatprep.subr.bf16.mxu0 %v1311_v44 }
 0x153   : > { %1314 = vmatpush1.bf16.msra.mxu0 %v1313_v51  ;;  %v380_v51 = vld [vmem:[#allocation5 + $0x10] sm:$0xff] }
 0x154   : > { %1316 = vmatprep.subr.bf16.mxu0 %v1315_v52  ;;  %v379_v52 = vld [vmem:[#allocation5 + $0x8] sm:$0xff] }
 0x157   : > { %1318 = vmatpush1.bf16.msra.mxu0 %v1317_v57 }
 0x158   : > { %1320 = vmatprep.subr.bf16.mxu0 %v1319_v58 }
 0x15b   : > { %1322 = vmatpush1.bf16.msra.mxu0 %v1321_v63  ;;  %v384_v63 = vld [vmem:[#allocation5 + $0x30] sm:$0xff] }
 0x15c   : > { %1324 = vmatprep.subr.bf16.mxu0 %v1323_v0 }
 0x15f   : > { %1326 = vmatpush1.bf16.msra.mxu0 %v1325_v5 }
 0x160   : > { %1328 = vmatprep.subr.bf16.mxu0 %v1327_v6  ;;  %v383_v6 = vld [vmem:[#allocation5 + $0x28] sm:$0xff] }
 0x163   : > { %1330 = vmatpush1.bf16.msra.mxu0 %v1329_v10  ;;  %v1353_v10 = vpack.c.bf16 %v694_v60, %v692_v59  ;;  %v718_v59 = vld [vmem:[#allocation10 + $0xd0] sm:$0xff]  ;;  %v721_v60 = vld [vmem:[#allocation10 + $0xe8] sm:$0xff] }
 0x164   : > { %1332 = vmatprep.subr.bf16.mxu0 %v1331_v11 }
 0x167   : > { %1334 = vmatpush1.bf16.msra.mxu0 %v1333_v16  ;;  %v696_v16 = vld [vmem:[#allocation10 + $0x20] sm:$0xff] }
 0x168   : > { %1336 = vmatprep.subr.bf16.mxu0 %v1335_v17  ;;  %v698_v17 = vld [vmem:[#allocation10 + $0x30] sm:$0xff] }
 0x16b   : > { %1338 = vmatpush1.bf16.msra.mxu0 %v1337_v20  ;;  %v701_v20 = vld [vmem:[#allocation10 + $0x48] sm:$0xff] }
 0x16c   : > { %1340 = vmatprep.subr.bf16.mxu0 %v1339_v50  ;;  %v703_v50 = vld [vmem:[#allocation10 + $0x58] sm:$0xff] }
 0x16f   : > { %1342 = vmatpush1.bf16.msra.mxu0 %v1341_v25  ;;  %v1357_v25 = vpack.c.bf16 %v698_v17, %v696_v16  ;;  %v735_v16 = vld [vmem:[#allocation10 + $0x158] sm:$0xff] }
 0x170   : > { %1344 = vmatprep.subr.bf16.mxu0 %v1343_v26  ;;  %v1359_v26 = vpack.c.bf16 %v703_v50, %v701_v20  ;;  %v734_v20 = vld [vmem:[#allocation10 + $0x150] sm:$0xff]  ;;  %v737_v50 = vld [vmem:[#allocation10 + $0x168] sm:$0xff] }
 0x173   : > { %1346 = vmatpush1.bf16.msra.mxu0 %v1345_v29  ;;  %v705_v29 = vld [vmem:[#allocation10 + $0x68] sm:$0xff] }
 0x174   : > { %1348 = vmatprep.subr.bf16.mxu0 %v1347_v32  ;;  %v1363_v32 = vpack.c.bf16 %v707_v30, %v705_v29  ;;  %v743_v29 = vld [vmem:[#allocation10 + $0x198] sm:$0xff] }
 0x177   : > { %1350 = vmatpush1.bf16.msra.mxu0 %v1349_v35  ;;  %v709_v35 = vld [vmem:[#allocation10 + $0x88] sm:$0xff] }
 0x178   : > { %1352 = vmatprep.subr.bf16.mxu0 %v1351_v38  ;;  %v1367_v38 = vpack.c.bf16 %v711_v36, %v709_v35  ;;  %v747_v35 = vld [vmem:[#allocation10 + $0x1b8] sm:$0xff] }
 0x1cf   : > { %v516_v42 = vpop.f32.mrb[0].mxu1 }
 0x1d0   : > { %v2141_v43 = vmul.f32 %v516_v42, %v378_v39  ;;  %v518_v44 = vpop.f32.mrb[1].mxu1  ;;  %v680_v55 = vmul.f32 %v516_v42, %v380_v51  ;;  %v710_v42 = vld [vmem:[#allocation10 + $0x90] sm:$0xff] }
 0x1d1   : > { %v669_v61 = vmul.f32 %v518_v44, %v379_v52  ;;  %v681_v62 = vmul.f32 %v518_v44, %v381_v53  ;;  %v713_v44 = vld [vmem:[#allocation10 + $0xa8] sm:$0xff] }
 0x1d3   : > { %v522_v47 = vpop.f32.mrb[2].mxu1 }
 0x1d4   : > { %v2143_v48 = vmul.f32 %v522_v47, %v382_v45  ;;  %v524_v49 = vpop.f32.mrb[3].mxu1  ;;  %v682_v11 = vmul.f32 %v522_v47, %v384_v63 }
 0x1d5   : > { %v2151_v18 = vmul.f32 %v524_v49, %v383_v6  ;;  %v683_v40 = vmul.f32 %v524_v49, %v385_v41 }
 0x20f   : > { %v657_v54 = vpop.f32.mrb[4].mxu1 }
 0x210   : > { %v2145_v56 = vmul.f32 %v657_v54, %v380_v51  ;;  %v684_v57 = vmul.f32 %v657_v54, %v378_v39  ;;  %v659_v58 = vpop.f32.mrb[5].mxu1  ;;  %v708_v39 = vld [vmem:[#allocation10 + $0x80] sm:$0xff]  ;;  %v719_v54 = vld [vmem:[#allocation10 + $0xd8] sm:$0xff] }
 0x211   : > { %v673_v0 = vmul.f32 %v659_v58, %v381_v53  ;;  %v685_v1 = vmul.f32 %v659_v58, %v379_v52  ;;  %v1369_v47 = vpack.c.bf16 %v710_v42, %v708_v39  ;;  %v712_v51 = vld [vmem:[#allocation10 + $0xa0] sm:$0xff]  ;;  %v714_v52 = vld [vmem:[#allocation10 + $0xb0] sm:$0xff]  ;;  %v717_v53 = vld [vmem:[#allocation10 + $0xc8] sm:$0xff] }
 0x212   : > { %v676_v4 = vsub.f32 %v2141_v43, %v2145_v56  ;;  %v688_v5 = vadd.f32 %v684_v57, %v680_v55  ;;  %v1373_v55 = vpack.c.bf16 %v714_v52, %v712_v51  ;;  %v1375_v57 = vpack.c.bf16 %v719_v54, %v717_v53  ;;  %v716_v58 = vld [vmem:[#allocation10 + $0xc0] sm:$0xff]  ;;  %v746_v39 = vld [vmem:[#allocation10 + $0x1b0] sm:$0xff]  ;;  %v749_v42 = vld [vmem:[#allocation10 + $0x1c8] sm:$0xff] }
 0x213   : > { %v677_v7 = vsub.f32 %v669_v61, %v673_v0  ;;  %v663_v8 = vpop.f32.mrb[6].mxu1  ;;  %v689_v9 = vadd.f32 %v685_v1, %v681_v62  ;;  %v723_v61 = vld [vmem:[#allocation10 + $0xf8] sm:$0xff]  ;;  %v1377_v62 = vpack.c.bf16 %v718_v59, %v716_v58  ;;  %v720_v0 = vld [vmem:[#allocation10 + $0xe0] sm:$0xff]  ;;  %v722_v1 = vld [vmem:[#allocation10 + $0xf0] sm:$0xff] }
 0x214   : > { %v2149_v12 = vmul.f32 %v663_v8, %v384_v63  ;;  %v686_v13 = vmul.f32 %v663_v8, %v382_v45  ;;  %v665_v14 = vpop.f32.mrb[7].mxu1  ;;  %v715_v45 = vld [vmem:[#allocation10 + $0xb8] sm:$0xff]  ;;  %v1379_v63 = vpack.c.bf16 %v723_v61, %v721_v60  ;;  %v729_v8 = vld [vmem:[#allocation10 + $0x128] sm:$0xff]  ;;  %v750_v51 = vld [vmem:[#allocation10 + $0x1d0] sm:$0xff] }
 0x215   : > { %v2153_v19 = vmul.f32 %v665_v14, %v385_v41  ;;  %v687_v46 = vmul.f32 %v665_v14, %v383_v6  ;;  %884 = vmatprep.mubr.f32.mxu0 %v689_v9  ;;  %v1371_v49 = vpack.c.bf16 %v715_v45, %v713_v44  ;;  %v1383_v6 = vpack.c.bf16 %v727_v3, %v725_v2  ;;  %v724_v41 = vld [vmem:[#allocation10 + $0x100] sm:$0xff]  ;;  %v731_v9 = vld [vmem:[#allocation10 + $0x138] sm:$0xff]  ;;  %v730_v14 = vld [vmem:[#allocation10 + $0x130] sm:$0xff] }
 0x216   : > { %v678_v21 = vsub.f32 %v2143_v48, %v2149_v12  ;;  %v690_v22 = vadd.f32 %v686_v13, %v682_v11  ;;  %885 = vmatmul.mubr.f32.vlgmr.msra.gmra.mrb[0].mxu0 %v688_v5  ;;  %v1381_v5 = vpack.c.bf16 %v722_v1, %v720_v0  ;;  %v1387_v11 = vpack.c.bf16 %v731_v9, %v729_v8  ;;  %v728_v13 = vld [vmem:[#allocation10 + $0x120] sm:$0xff]  ;;  %v751_v44 = vld [vmem:[#allocation10 + $0x1d8] sm:$0xff]  ;;  %v753_v52 = vld [vmem:[#allocation10 + $0x1e8] sm:$0xff] }
 0x217   : > { %v679_v23 = vsub.f32 %v2151_v18, %v2153_v19  ;;  %v691_v24 = vadd.f32 %v687_v46, %v683_v40  ;;  %1354 = vmatpush1.bf16.msra.mxu0 %v1353_v10  ;;  %v1389_v17 = vpack.c.bf16 %v730_v14, %v728_v13  ;;  %v732_v46 = vld [vmem:[#allocation10 + $0x140] sm:$0xff]  ;;  %v755_v53 = vld [vmem:[#allocation10 + $0x1f8] sm:$0xff]  ;;  %v754_v58 = vld [vmem:[#allocation10 + $0x1f0] sm:$0xff] }
 0x218   : > { %1356 = vmatprep.subr.bf16.mxu0 %v1355_v15  ;;  %v733_v15 = vld [vmem:[#allocation10 + $0x148] sm:$0xff] }
 0x219   : > { %890 = vmatprep.mubr.f32.mxu0 %v691_v24  ;;  %v1391_v40 = vpack.c.bf16 %v735_v16, %v733_v15  ;;  %v1393_v24 = vpack.c.bf16 %v734_v20, %v732_v46 }
 0x21a   : > { %891 = vmatmul.mubr.f32.gmra.mrb[2].mxu0 %v690_v22  ;;  %v739_v22 = vld [vmem:[#allocation10 + $0x178] sm:$0xff] }
 0x21b   : > { %1358 = vmatpush1.bf16.msra.mxu0 %v1357_v25  ;;  %961 = vmatprep.mubr.f32.mxu0 %v677_v7  ;;  %v726_v7 = vld [vmem:[#allocation10 + $0x110] sm:$0xff]  ;;  %v1395_v25 = vpack.c.bf16 %v739_v22, %v737_v50 }
 0x21c   : > { %1360 = vmatprep.subr.bf16.mxu0 %v1359_v26  ;;  %v1385_v10 = vpack.c.bf16 %v726_v7, %v724_v41  ;;  %v736_v26 = vld [vmem:[#allocation10 + $0x160] sm:$0xff] }
 0x21d   : > { %v1397_v30 = vpack.c.bf16 %v738_v27, %v736_v26 }
 0x21f   : > { %1362 = vmatpush1.bf16.msra.mxu0 %v1361_v31  ;;  %v1399_v31 = vpack.c.bf16 %v743_v29, %v741_v28 }
 0x220   : > { %1364 = vmatprep.subr.bf16.mxu0 %v1363_v32  ;;  %v740_v32 = vld [vmem:[#allocation10 + $0x180] sm:$0xff] }
 0x221   : > { %v1401_v36 = vpack.c.bf16 %v742_v33, %v740_v32 }
 0x223   : > { %1366 = vmatpush1.bf16.msra.mxu0 %v1365_v37  ;;  %v1403_v37 = vpack.c.bf16 %v747_v35, %v745_v34 }
 0x224   : > { %1368 = vmatprep.subr.bf16.mxu0 %v1367_v38  ;;  %v744_v38 = vld [vmem:[#allocation10 + $0x1a0] sm:$0xff] }
 0x225   : > { %v1405_v45 = vpack.c.bf16 %v746_v39, %v744_v38 }
 0x227   : > { %1370 = vmatpush1.bf16.msra.mxu0 %v1369_v47  ;;  %v1407_v47 = vpack.c.bf16 %v751_v44, %v749_v42 }
 0x228   : > { %1372 = vmatprep.subr.bf16.mxu0 %v1371_v49  ;;  %v748_v49 = vld [vmem:[#allocation10 + $0x1c0] sm:$0xff] }
 0x229   : > { %v1409_v54 = vpack.c.bf16 %v750_v51, %v748_v49 }
 0x22b   : > { %1374 = vmatpush1.bf16.msra.mxu0 %v1373_v55  ;;  %v1411_v55 = vpack.c.bf16 %v755_v53, %v753_v52 }
 0x22c   : > { %1376 = vmatprep.subr.bf16.mxu0 %v1375_v57  ;;  %v752_v57 = vld [vmem:[#allocation10 + $0x1e0] sm:$0xff] }
 0x22d   : > { %v1413_v59 = vpack.c.bf16 %v754_v58, %v752_v57 }
 0x22f   : > { %1378 = vmatpush1.bf16.msra.mxu0 %v1377_v62 }
 0x230   : > { %1380 = vmatprep.subr.bf16.mxu0 %v1379_v63 }
 0x233   : > { %1382 = vmatpush1.bf16.msra.mxu0 %v1381_v5 }
 0x234   : > { %1384 = vmatprep.subr.bf16.mxu0 %v1383_v6 }
 0x237   : > { %1386 = vmatpush1.bf16.msra.mxu0 %v1385_v10 }
 0x238   : > { %1388 = vmatprep.subr.bf16.mxu0 %v1387_v11 }
 0x23b   : > { %1390 = vmatpush1.bf16.msra.mxu0 %v1389_v17 }
 0x23c   : > { %1392 = vmatprep.subr.bf16.mxu0 %v1391_v40 }
 0x23f   : > { %1394 = vmatpush1.bf16.msra.mxu0 %v1393_v24 }
 0x240   : > { %1396 = vmatprep.subr.bf16.mxu0 %v1395_v25 }
 0x243   : > { %1398 = vmatpush1.bf16.msra.mxu0 %v1397_v30 }
 0x244   : > { %1400 = vmatprep.subr.bf16.mxu0 %v1399_v31 }
 0x247   : > { %1402 = vmatpush1.bf16.msra.mxu0 %v1401_v36 }
 0x248   : > { %1404 = vmatprep.subr.bf16.mxu0 %v1403_v37 }
 0x24b   : > { %1406 = vmatpush1.bf16.msra.mxu0 %v1405_v45 }
 0x24c   : > { %1408 = vmatprep.subr.bf16.mxu0 %v1407_v47 }
 0x24f   : > { %1410 = vmatpush1.bf16.msra.mxu0 %v1409_v54 }
 0x250   : > { %1412 = vmatprep.subr.bf16.mxu0 %v1411_v55 }
 0x253   : > { %1414 = vmatpush1.bf16.msra.mxu0 %v1413_v59 }
 0x256   : > { %962 = vmatmul.mubr.f32.vlgmr.msra.gmra.mrb[0].mxu0 %v676_v4 }
 0x257   : > { %967 = vmatprep.mubr.f32.mxu0 %v679_v23 }
 0x25a   : > { %968 = vmatmul.mubr.f32.gmra.mrb[2].mxu0 %v678_v21 }
 0x329   : > { %v963_v60 = vpop.f32.mrb[0].mxu0 }
 0x32a   : > { %974 = vst [vmem:[%s370_s28] sm:$0xff] %v963_v60  ;;  %v965_v61 = vpop.f32.mrb[1].mxu0 }
 0x32b   : > { %975 = vst [vmem:[%s370_s28 + $0x8] sm:$0xff] %v965_v61 }
 0x32d   : > { %v969_v43 = vpop.f32.mrb[2].mxu0 }
 0x32e   : > { %976 = vst [vmem:[%s370_s28 + $0x10] sm:$0xff] %v969_v43  ;;  %v971_v48 = vpop.f32.mrb[3].mxu0 }
 0x32f   : > { %977 = vst [vmem:[%s370_s28 + $0x18] sm:$0xff] %v971_v48 }
 0x330   : > { %1721 = shalt.err (!%p1718_p8)
}
 0x331   : > { %s1722_s8 = scalar_lea.hbm %s2176_s9, 512  ;;  %s1726_s28 = scalar_lea.hbm %s2254_s12, 1024 }
 0x332   : > { %p1723_p3 = scmp.ne.s32.totalorder %s2176_s9, %s1722_s8  ;;  %p1727_p10 = scmp.lt.u32.totalorder %s2176_s9, %s2254_s12 }
 0x333   : > { %p1728_p1 = scmp.lt.u32.totalorder %s1726_s28, %s1722_s8  ;;  %p1730_p6 = scmp.lt.u32.totalorder %s1722_s8, %s2176_s9 }
 0x334   : > { %p1724_p7 = pnand %p1723_p3, %p2255_p2 }
 0x335   : > { %p1729_p13 = por %p1728_p1, %p1727_p10 }
 0x336   : > { %p1725_p9 = pneg %p1724_p7 }
 0x337   : > { %p1731_p4 = por %p1730_p6, %p1729_p13 }
 0x339   : > { %p1732_p5 = pnand %p1731_p4, %p1725_p9 }
 0x33b   : > { %1735 = shalt.err (!%p1732_p5)
}
 0x33c   : > { %s1815_s11 = smov 256   ;;  %s1816_s10 = smov 16  }
 0x33d   : > { %1441 = dma.vmem_to_hbm [thread:$0]  (%p2255_p2), %s2171_s29, 512, %s2176_s9, %s979_s19, %s1815_s11, %s1815_s11, %s1816_s10  }
 0x33e PF: > { %s1010_s24 = sand.u32 1, %s1782_s21   ;;  %p2256_p11 = scmp.ne.s32.totalorder %s2249_s17, 0 }
 0x33f   : > { %p2257_p12 = scmp.ge.s32.totalorder %s1802_s26, 2  ;;  %s1011_s13 = scalar_lea.sflag [#allocation4], %s1010_s24 }
 0x341   : > { %p1464_p0 = pnand %p2257_p12, %p2256_p11 }
 0x343   : > { %1777 = dma.done.wait (!%p1464_p0), %s1011_s13, 512  }
 0x344   : > { %1779 = vsyncadd (!%p1464_p0), %s1011_s13, 4294966784  ;;  %s25_s26 = sadd.s32 1, %s1802_s26   ;;  %s2258_s21 = smov %s1786_s22 }
 0x345   : > { %p22_p8 = scmp.ge.s32.totalorder %s25_s26, 4   ;;  %s2259_s22 = smov %s1790_s23 }
 0x346   : > { %s2260_s23 = smov %s2042_s15  ;;  %s2261_s24 = smov %s1798_s25 }
 0x347   : > { %s2262_s25 = smov %s2264_s16  ;;  %24 = sbr.rel (!%p22_p8) target bundleno = 11 (0xb), region = 110 }
 0x34e   :  { %1016 = vsyncpa [#allocation3], 1 }
 0x34f   :  { %1018 = vsyncpa [#allocation3 + $0x1], 1 }
 0x350   :  { %1019 = vsyncpa [#allocation6], 1 }
 0x351   :  { %1020 = vsyncpa [#allocation9], 1 }
 0x352   :  { %1021 = vsyncpa [#allocation12], 1 }
 0x353   :  { %1022 = vsyncpa [#allocation4], 1 }
 0x354   :  { %1024 = vsyncpa [#allocation4 + $0x1], 1 }

</bundles_post_ra>
